<compile_context>
chip_gen: v5e
topology: v5e:2x2
jax: 0.10.0
libtpu: 0.0.40
codegen_flags: <defaults>
</compile_context>

<pallas_src>
import functools

import jax
import jax.numpy as jnp
from jax.experimental import pallas as pl
from jax.experimental.pallas import tpu as pltpu


def _round_up(x, m):
    return (x + m - 1) // m * m


# ----------------------------------------------------------------------------
# Pallas kernels
# ----------------------------------------------------------------------------
def conv_relu_pool_kernel(a0_ref, a1_ref, a2_ref, a3_ref, w_ref, b_ref, o_ref):
    """Fused conv (as im2col matmul) + bias + ReLU + 2x2/2 max-pool.

    a*_ref: (1, Mp, Kp) bf16 — im2col patches for the 4 taps of each pooling
            window (rows ordered (y', x') over the pooled output grid).
    w_ref : (Kp, 128) bf16, b_ref: (1, 128) f32, o_ref: (1, Mp, 128) bf16.
    """
    w = w_ref[...]
    b = b_ref[...]

    def tap(a_ref):
        return jnp.dot(a_ref[0], w, preferred_element_type=jnp.float32)

    m = jnp.maximum(jnp.maximum(tap(a0_ref), tap(a1_ref)),
                    jnp.maximum(tap(a2_ref), tap(a3_ref)))
    # bias is identical across taps and ReLU is monotone, so
    # relu(max(taps) + b) == max_t relu(tap_t + b)  (matches torch semantics).
    o_ref[0] = jnp.maximum(m + b, 0.0).astype(o_ref.dtype)


def fc_stack_kernel(x_ref, w1_ref, b1_ref, w2_ref, b2_ref, w3_ref, b3_ref,
                    o_ref):
    """fc1 -> ReLU -> fc2 -> ReLU -> fc3, all in one kernel (f32 accumulate)."""
    h = jnp.dot(x_ref[...], w1_ref[...], preferred_element_type=jnp.float32)
    h = jnp.maximum(h + b1_ref[...], 0.0).astype(jnp.bfloat16)
    h = jnp.dot(h, w2_ref[...], preferred_element_type=jnp.float32)
    h = jnp.maximum(h + b2_ref[...], 0.0).astype(jnp.bfloat16)
    h = jnp.dot(h, w3_ref[...], preferred_element_type=jnp.float32)
    o_ref[...] = h + b3_ref[...]


# ----------------------------------------------------------------------------
# Pallas wrappers
# ----------------------------------------------------------------------------
def conv_relu_pool(taps, w, b):
    """taps: 4 x (N, Mp, Kp) bf16; w: (Kp, 128) bf16; b: (1, 128) f32.
    Returns pooled activations (N, Mp, 128) bf16 (rows (y',x'), padded)."""
    N, Mp, Kp = taps[0].shape
    Np = w.shape[1]
    cost = pl.CostEstimate(
        flops=2 * 4 * N * Mp * Kp * Np,
        transcendentals=0,
        bytes_accessed=4 * N * Mp * Kp * 2 + Kp * Np * 2 + Np * 4
        + N * Mp * Np * 2)

    return pl.pallas_call(
        conv_relu_pool_kernel,
        out_shape=jax.ShapeDtypeStruct((N, Mp, Np), jnp.bfloat16),
        grid_spec=pltpu.PrefetchScalarGridSpec(
            num_scalar_prefetch=0,
            grid=(N,),
            in_specs=[pl.BlockSpec((1, Mp, Kp), lambda n: (n, 0, 0))] * 4 + [
                pl.BlockSpec((Kp, Np), lambda n: (0, 0)),
                pl.BlockSpec((1, Np), lambda n: (0, 0)),
            ],
            out_specs=pl.BlockSpec((1, Mp, Np), lambda n: (n, 0, 0)),
        ),
        compiler_params=pltpu.CompilerParams(
            dimension_semantics=("parallel",)),
        cost_estimate=cost,
    )(*taps, w, b)


def fc_stack(x, w1, b1, w2, b2, w3, b3):
    """x: (Mp, K1) bf16 (row-padded batch). Returns (Mp, 128) f32 logits."""
    Mp, K1 = x.shape
    cost = pl.CostEstimate(
        flops=2 * Mp * (K1 * 128 + 128 * 128 + 128 * 128),
        transcendentals=0,
        bytes_accessed=Mp * K1 * 2 + (K1 + 256) * 128 * 2 + 3 * 128 * 4
        + Mp * 128 * 4)

    return pl.pallas_call(
        fc_stack_kernel,
        out_shape=jax.ShapeDtypeStruct((Mp, 128), jnp.float32),
        grid_spec=pltpu.PrefetchScalarGridSpec(
            num_scalar_prefetch=0,
            grid=(1,),
            in_specs=[
                pl.BlockSpec((Mp, K1), lambda i: (0, 0)),
                pl.BlockSpec(w1.shape, lambda i: (0, 0)),
                pl.BlockSpec((1, 128), lambda i: (0, 0)),
                pl.BlockSpec(w2.shape, lambda i: (0, 0)),
                pl.BlockSpec((1, 128), lambda i: (0, 0)),
                pl.BlockSpec(w3.shape, lambda i: (0, 0)),
                pl.BlockSpec((1, 128), lambda i: (0, 0)),
            ],
            out_specs=pl.BlockSpec((Mp, 128), lambda i: (0, 0)),
        ),
        compiler_params=pltpu.CompilerParams(
            dimension_semantics=("arbitrary",)),
        cost_estimate=cost,
    )(x, w1, b1, w2, b2, w3, b3)


# ----------------------------------------------------------------------------
# XLA-side im2col for the 4 pooling taps (tiny glue; patches go straight to
# the fused conv+pool kernel).
# ----------------------------------------------------------------------------
def pool_taps_im2col(x, kh, kw, kp):
    """x: (N,H,W,C). Valid conv (stride 1) followed by 2x2/2 max-pool.
    Returns 4 patch arrays (N, Mp, kp) bf16 (rows ordered (y',x'),
    K ordered (KH, KW, C)) plus the pooled spatial dims (ph, pw)."""
    N, H, W, C = x.shape
    oh, ow = H - kh + 1, W - kw + 1
    ph, pw = oh // 2, ow // 2
    K, M = kh * kw * C, ph * pw
    mp = _round_up(M, 8)
    taps = []
    for py in (0, 1):
        for px in (0, 1):
            cols = [x[:, py + i: py + i + 2 * ph: 2,
                      px + j: px + j + 2 * pw: 2, :]
                    for i in range(kh) for j in range(kw)]
            t = jnp.stack(cols, axis=3).reshape(N, M, K)      # (N, M, KH*KW*C)
            taps.append(jnp.pad(t, ((0, 0), (0, mp - M), (0, kp - K))))
    return taps, ph, pw


# ----------------------------------------------------------------------------
# Parameter init (PyTorch layouts) + one-time kernel-ready preparation
# ----------------------------------------------------------------------------
def init_params(key):
    def conv_p(k, o, c, kh, kw):
        k1, k2 = jax.random.split(k)
        fan_in = c * kh * kw
        w = jax.random.normal(k1, (o, c, kh, kw), jnp.float32) * (2.0 / fan_in) ** 0.5
        b = jax.random.normal(k2, (o,), jnp.float32) * 0.01
        return w, b                                  # torch layout [O,C,KH,KW]

    def fc_p(k, o, i):
        k1, k2 = jax.random.split(k)
        w = jax.random.normal(k1, (o, i), jnp.float32) * (2.0 / i) ** 0.5
        b = jax.random.normal(k2, (o,), jnp.float32) * 0.01
        return w, b                                  # torch layout [out,in]

    ks = jax.random.split(key, 5)
    return {
        "conv1": conv_p(ks[0], 6, 3, 5, 5),
        "conv2": conv_p(ks[1], 16, 6, 5, 5),
        "fc1": fc_p(ks[2], 120, 16 * 5 * 5),
        "fc2": fc_p(ks[3], 84, 120),
        "fc3": fc_p(ks[4], 10, 84),
    }


def prepare_params(params):
    """Reshape, pad to tile multiples, and cast weights to bf16 ONCE."""
    def prep_conv(w, b):
        O, C, KH, KW = w.shape
        K = KH * KW * C
        Kp = _round_up(K, 128)
        w2 = w.transpose(2, 3, 1, 0).reshape(K, O)   # K order (KH,KW,C) x O
        return {
            "w": jnp.pad(w2, ((0, Kp - K), (0, 128 - O))).astype(jnp.bfloat16),
            "b": jnp.pad(b, (0, 128 - O)).reshape(1, 128).astype(jnp.float32),
            "kh": KH, "kw": KW, "n_out": O,
        }

    def prep_fc(w, b):
        O, I = w.shape
        return (jnp.pad(w.T, ((0, 128 - I), (0, 128 - O))).astype(jnp.bfloat16),
                jnp.pad(b, (0, 128 - O)).reshape(1, 128).astype(jnp.float32))

    # fc1 consumes the conv2+pool output exactly as the kernel lays it out:
    # (pos p = y*5+x padded to 32, channel c padded to 128) flattened to 4096.
    # Absorb torch's (C,H,W)-order .view() flatten into a permuted, zero-padded
    # weight so no transpose/slice is needed on the activation side.
    w1, b1 = params["fc1"]                            # (120, 400), idx=c*25+y*5+x
    w1 = w1.reshape(120, 16, 5, 5).transpose(2, 3, 1, 0)   # (y, x, c, o)
    w1 = jnp.pad(w1, ((0, 0), (0, 0), (0, 128 - 16), (0, 128 - 120)))
    w1 = w1.reshape(25, 128, 128)
    w1 = jnp.pad(w1, ((0, 32 - 25), (0, 0), (0, 0))).reshape(32 * 128, 128)

    w2p, b2p = prep_fc(*params["fc2"])
    w3p, b3p = prep_fc(*params["fc3"])
    return {
        "conv1": prep_conv(*params["conv1"]),
        "conv2": prep_conv(*params["conv2"]),
        "fc": {
            "w1": w1.astype(jnp.bfloat16),
            "b1": jnp.pad(b1, (0, 128 - 120)).reshape(1, 128).astype(jnp.float32),
            "w2": w2p, "b2": b2p, "w3": w3p, "b3": b3p,
        },
    }


# ----------------------------------------------------------------------------
# LeNet forward
# ----------------------------------------------------------------------------
def lenet_forward(params, img_nchw):
    N = img_nchw.shape[0]
    x = img_nchw.transpose(0, 2, 3, 1).astype(jnp.bfloat16)   # NHWC, bf16 once

    c1 = params["conv1"]
    taps, ph, pw = pool_taps_im2col(x, c1["kh"], c1["kw"], c1["w"].shape[0])
    y = conv_relu_pool(taps, c1["w"], c1["b"])        # (N, 200, 128) bf16, pooled
    x = y[:, :ph * pw, :c1["n_out"]].reshape(N, ph, pw, c1["n_out"])  # (N,14,14,6)

    c2 = params["conv2"]
    taps, ph, pw = pool_taps_im2col(x, c2["kh"], c2["kw"], c2["w"].shape[0])
    y = conv_relu_pool(taps, c2["w"], c2["b"])        # (N, 32, 128) bf16, pooled

    # Flatten stays in the kernel's padded layout; permutation lives in fc1's
    # weight. Pad batch rows to 8 so the FC dots stay sublane-aligned.
    h = y.reshape(N, -1)                              # (N, 4096), idx = p*128 + c
    mp = _round_up(N, 8)
    h = jnp.pad(h, ((0, mp - N), (0, 0)))             # (8, 4096) bf16

    fc = params["fc"]
    logits = fc_stack(h, fc["w1"], fc["b1"], fc["w2"], fc["b2"],
                      fc["w3"], fc["b3"])             # (8, 128) f32
    return logits[:N, :10]                            # slice once, at the end


if __name__ == "__main__":
    key = jax.random.PRNGKey(0)
    pkey, xkey = jax.random.split(key)
    params = prepare_params(init_params(pkey))        # one-time pad/cast of weights
    # 16*5*5 flatten implies 32x32 inputs (CIFAR-style); batch=2.
    img = jax.random.normal(xkey, (2, 3, 32, 32), jnp.float32)

    fwd = jax.jit(functools.partial(lenet_forward, params))
    out = jax.block_until_ready(fwd(img))
    assert out.shape == (2, 10) and out.dtype == jnp.float32
    print("KERNEL_OK")
</pallas_src>

<mosaic_0001>
module attributes {stable_mosaic.version = 11 : i64} {
  func.func @conv_relu_pool_kernel(%arg0: i32, %arg1: memref<1x200x128xbf16, #tpu.memory_space<vmem>>, %arg2: memref<1x200x128xbf16, #tpu.memory_space<vmem>>, %arg3: memref<1x200x128xbf16, #tpu.memory_space<vmem>>, %arg4: memref<1x200x128xbf16, #tpu.memory_space<vmem>>, %arg5: memref<128x128xbf16, #tpu.memory_space<vmem>>, %arg6: memref<1x128xf32, #tpu.memory_space<vmem>>, %arg7: memref<1x200x128xbf16, #tpu.memory_space<vmem>>) attributes {dimension_semantics = [#tpu.dimension_semantics<parallel>], iteration_bounds = array<i64: 2>, scalar_prefetch = 0 : i64, scratch_operands = 0 : i64, tpu.core_type = #tpu.core_type<tc>, window_params = [{transform_indices = @transform_0, window_bounds = array<i64: 1, 200, 128>}, {transform_indices = @transform_1, window_bounds = array<i64: 1, 200, 128>}, {transform_indices = @transform_2, window_bounds = array<i64: 1, 200, 128>}, {transform_indices = @transform_3, window_bounds = array<i64: 1, 200, 128>}, {pipeline_mode = #tpu.pipeline_mode<synchronous>, transform_indices = @transform_4, window_bounds = array<i64: 128, 128>}, {pipeline_mode = #tpu.pipeline_mode<synchronous>, transform_indices = @transform_5, window_bounds = array<i64: 1, 128>}, {transform_indices = @transform_6, window_bounds = array<i64: 1, 200, 128>}]} {
    %c0 = arith.constant 0 : index
    %c0_0 = arith.constant 0 : index
    %0 = vector.load %arg5[%c0, %c0_0] : memref<128x128xbf16, #tpu.memory_space<vmem>>, vector<128x128xbf16>
    %c0_1 = arith.constant 0 : index
    %c0_2 = arith.constant 0 : index
    %1 = vector.load %arg6[%c0_1, %c0_2] : memref<1x128xf32, #tpu.memory_space<vmem>>, vector<1x128xf32>
    %c0_3 = arith.constant 0 : index
    %c0_4 = arith.constant 0 : index
    %c0_5 = arith.constant 0 : index
    %2 = vector.load %arg1[%c0_3, %c0_4, %c0_5] : memref<1x200x128xbf16, #tpu.memory_space<vmem>>, vector<1x200x128xbf16>
    %3 = vector.shape_cast %2 : vector<1x200x128xbf16> to vector<200x128xbf16>
    %cst = arith.constant dense<0.000000e+00> : vector<200x128xf32>
    %4 = tpu.matmul %3, %0, %cst {dimension_numbers = #tpu.dot_dimension_numbers<[1], [0], [0], [1], [0, 0, 1, 1], [], []>} : vector<200x128xbf16>, vector<128x128xbf16>, vector<200x128xf32> -> vector<200x128xf32>
    %c0_6 = arith.constant 0 : index
    %c0_7 = arith.constant 0 : index
    %c0_8 = arith.constant 0 : index
    %5 = vector.load %arg2[%c0_6, %c0_7, %c0_8] : memref<1x200x128xbf16, #tpu.memory_space<vmem>>, vector<1x200x128xbf16>
    %6 = vector.shape_cast %5 : vector<1x200x128xbf16> to vector<200x128xbf16>
    %cst_9 = arith.constant dense<0.000000e+00> : vector<200x128xf32>
    %7 = tpu.matmul %6, %0, %cst_9 {dimension_numbers = #tpu.dot_dimension_numbers<[1], [0], [0], [1], [0, 0, 1, 1], [], []>} : vector<200x128xbf16>, vector<128x128xbf16>, vector<200x128xf32> -> vector<200x128xf32>
    %8 = arith.maximumf %4, %7 : vector<200x128xf32>
    %c0_10 = arith.constant 0 : index
    %c0_11 = arith.constant 0 : index
    %c0_12 = arith.constant 0 : index
    %9 = vector.load %arg3[%c0_10, %c0_11, %c0_12] : memref<1x200x128xbf16, #tpu.memory_space<vmem>>, vector<1x200x128xbf16>
    %10 = vector.shape_cast %9 : vector<1x200x128xbf16> to vector<200x128xbf16>
    %cst_13 = arith.constant dense<0.000000e+00> : vector<200x128xf32>
    %11 = tpu.matmul %10, %0, %cst_13 {dimension_numbers = #tpu.dot_dimension_numbers<[1], [0], [0], [1], [0, 0, 1, 1], [], []>} : vector<200x128xbf16>, vector<128x128xbf16>, vector<200x128xf32> -> vector<200x128xf32>
    %c0_14 = arith.constant 0 : index
    %c0_15 = arith.constant 0 : index
    %c0_16 = arith.constant 0 : index
    %12 = vector.load %arg4[%c0_14, %c0_15, %c0_16] : memref<1x200x128xbf16, #tpu.memory_space<vmem>>, vector<1x200x128xbf16>
    %13 = vector.shape_cast %12 : vector<1x200x128xbf16> to vector<200x128xbf16>
    %cst_17 = arith.constant dense<0.000000e+00> : vector<200x128xf32>
    %14 = tpu.matmul %13, %0, %cst_17 {dimension_numbers = #tpu.dot_dimension_numbers<[1], [0], [0], [1], [0, 0, 1, 1], [], []>} : vector<200x128xbf16>, vector<128x128xbf16>, vector<200x128xf32> -> vector<200x128xf32>
    %15 = arith.maximumf %11, %14 : vector<200x128xf32>
    %16 = arith.maximumf %8, %15 : vector<200x128xf32>
    %17 = vector.broadcast %1 : vector<1x128xf32> to vector<200x128xf32>
    %18 = arith.addf %16, %17 : vector<200x128xf32>
    %cst_18 = arith.constant 0.000000e+00 : f32
    %19 = vector.broadcast %cst_18 : f32 to vector<200x128xf32>
    %20 = arith.maximumf %18, %19 : vector<200x128xf32>
    %21 = arith.truncf %20 : vector<200x128xf32> to vector<200x128xbf16>
    %c0_19 = arith.constant 0 : index
    %c0_20 = arith.constant 0 : index
    %c0_21 = arith.constant 0 : index
    %22 = vector.load %arg7[%c0_19, %c0_20, %c0_21] : memref<1x200x128xbf16, #tpu.memory_space<vmem>>, vector<1x200x128xbf16>
    %23 = vector.shape_cast %22 : vector<1x200x128xbf16> to vector<200x128xbf16>
    %24 = vector.shape_cast %21 : vector<200x128xbf16> to vector<1x200x128xbf16>
    tpu.vector_store %arg7[%c0_19, %c0_20, %c0_21], %24 {strides = array<i32>} : memref<1x200x128xbf16, #tpu.memory_space<vmem>>, vector<1x200x128xbf16>,
    return
  }
  func.func @transform_0(%arg0: i32) -> (i32, i32, i32) {
    %c0_i32 = arith.constant 0 : i32
    %c0_i32_0 = arith.constant 0 : i32
    %c0_i32_1 = arith.constant 0 : i32
    return %arg0, %c0_i32, %c0_i32_0 : i32, i32, i32
  }
  func.func @transform_1(%arg0: i32) -> (i32, i32, i32) {
    %c0_i32 = arith.constant 0 : i32
    %c0_i32_0 = arith.constant 0 : i32
    %c0_i32_1 = arith.constant 0 : i32
    return %arg0, %c0_i32, %c0_i32_0 : i32, i32, i32
  }
  func.func @transform_2(%arg0: i32) -> (i32, i32, i32) {
    %c0_i32 = arith.constant 0 : i32
    %c0_i32_0 = arith.constant 0 : i32
    %c0_i32_1 = arith.constant 0 : i32
    return %arg0, %c0_i32, %c0_i32_0 : i32, i32, i32
  }
  func.func @transform_3(%arg0: i32) -> (i32, i32, i32) {
    %c0_i32 = arith.constant 0 : i32
    %c0_i32_0 = arith.constant 0 : i32
    %c0_i32_1 = arith.constant 0 : i32
    return %arg0, %c0_i32, %c0_i32_0 : i32, i32, i32
  }
  func.func @transform_4(%arg0: i32) -> (i32, i32) {
    %c0_i32 = arith.constant 0 : i32
    %c0_i32_0 = arith.constant 0 : i32
    %c0_i32_1 = arith.constant 0 : i32
    return %c0_i32, %c0_i32_0 : i32, i32
  }
  func.func @transform_5(%arg0: i32) -> (i32, i32) {
    %c0_i32 = arith.constant 0 : i32
    %c0_i32_0 = arith.constant 0 : i32
    %c0_i32_1 = arith.constant 0 : i32
    return %c0_i32, %c0_i32_0 : i32, i32
  }
  func.func @transform_6(%arg0: i32) -> (i32, i32, i32) {
    %c0_i32 = arith.constant 0 : i32
    %c0_i32_0 = arith.constant 0 : i32
    %c0_i32_1 = arith.constant 0 : i32
    return %arg0, %c0_i32, %c0_i32_0 : i32, i32, i32
  }
}

module attributes {stable_mosaic.version = 11 : i64} {
  func.func @conv_relu_pool_kernel(%arg0: i32, %arg1: memref<1x32x256xbf16, #tpu.memory_space<vmem>>, %arg2: memref<1x32x256xbf16, #tpu.memory_space<vmem>>, %arg3: memref<1x32x256xbf16, #tpu.memory_space<vmem>>, %arg4: memref<1x32x256xbf16, #tpu.memory_space<vmem>>, %arg5: memref<256x128xbf16, #tpu.memory_space<vmem>>, %arg6: memref<1x128xf32, #tpu.memory_space<vmem>>, %arg7: memref<1x32x128xbf16, #tpu.memory_space<vmem>>) attributes {dimension_semantics = [#tpu.dimension_semantics<parallel>], iteration_bounds = array<i64: 2>, scalar_prefetch = 0 : i64, scratch_operands = 0 : i64, tpu.core_type = #tpu.core_type<tc>, window_params = [{transform_indices = @transform_0, window_bounds = array<i64: 1, 32, 256>}, {transform_indices = @transform_1, window_bounds = array<i64: 1, 32, 256>}, {transform_indices = @transform_2, window_bounds = array<i64: 1, 32, 256>}, {transform_indices = @transform_3, window_bounds = array<i64: 1, 32, 256>}, {pipeline_mode = #tpu.pipeline_mode<synchronous>, transform_indices = @transform_4, window_bounds = array<i64: 256, 128>}, {pipeline_mode = #tpu.pipeline_mode<synchronous>, transform_indices = @transform_5, window_bounds = array<i64: 1, 128>}, {transform_indices = @transform_6, window_bounds = array<i64: 1, 32, 128>}]} {
    %c0 = arith.constant 0 : index
    %c0_0 = arith.constant 0 : index
    %0 = vector.load %arg5[%c0, %c0_0] : memref<256x128xbf16, #tpu.memory_space<vmem>>, vector<256x128xbf16>
    %c0_1 = arith.constant 0 : index
    %c0_2 = arith.constant 0 : index
    %1 = vector.load %arg6[%c0_1, %c0_2] : memref<1x128xf32, #tpu.memory_space<vmem>>, vector<1x128xf32>
    %c0_3 = arith.constant 0 : index
    %c0_4 = arith.constant 0 : index
    %c0_5 = arith.constant 0 : index
    %2 = vector.load %arg1[%c0_3, %c0_4, %c0_5] : memref<1x32x256xbf16, #tpu.memory_space<vmem>>, vector<1x32x256xbf16>
    %3 = vector.shape_cast %2 : vector<1x32x256xbf16> to vector<32x256xbf16>
    %cst = arith.constant dense<0.000000e+00> : vector<32x128xf32>
    %4 = tpu.matmul %3, %0, %cst {dimension_numbers = #tpu.dot_dimension_numbers<[1], [0], [0], [1], [0, 0, 1, 1], [], []>} : vector<32x256xbf16>, vector<256x128xbf16>, vector<32x128xf32> -> vector<32x128xf32>
    %c0_6 = arith.constant 0 : index
    %c0_7 = arith.constant 0 : index
    %c0_8 = arith.constant 0 : index
    %5 = vector.load %arg2[%c0_6, %c0_7, %c0_8] : memref<1x32x256xbf16, #tpu.memory_space<vmem>>, vector<1x32x256xbf16>
    %6 = vector.shape_cast %5 : vector<1x32x256xbf16> to vector<32x256xbf16>
    %cst_9 = arith.constant dense<0.000000e+00> : vector<32x128xf32>
    %7 = tpu.matmul %6, %0, %cst_9 {dimension_numbers = #tpu.dot_dimension_numbers<[1], [0], [0], [1], [0, 0, 1, 1], [], []>} : vector<32x256xbf16>, vector<256x128xbf16>, vector<32x128xf32> -> vector<32x128xf32>
    %8 = arith.maximumf %4, %7 : vector<32x128xf32>
    %c0_10 = arith.constant 0 : index
    %c0_11 = arith.constant 0 : index
    %c0_12 = arith.constant 0 : index
    %9 = vector.load %arg3[%c0_10, %c0_11, %c0_12] : memref<1x32x256xbf16, #tpu.memory_space<vmem>>, vector<1x32x256xbf16>
    %10 = vector.shape_cast %9 : vector<1x32x256xbf16> to vector<32x256xbf16>
    %cst_13 = arith.constant dense<0.000000e+00> : vector<32x128xf32>
    %11 = tpu.matmul %10, %0, %cst_13 {dimension_numbers = #tpu.dot_dimension_numbers<[1], [0], [0], [1], [0, 0, 1, 1], [], []>} : vector<32x256xbf16>, vector<256x128xbf16>, vector<32x128xf32> -> vector<32x128xf32>
    %c0_14 = arith.constant 0 : index
    %c0_15 = arith.constant 0 : index
    %c0_16 = arith.constant 0 : index
    %12 = vector.load %arg4[%c0_14, %c0_15, %c0_16] : memref<1x32x256xbf16, #tpu.memory_space<vmem>>, vector<1x32x256xbf16>
    %13 = vector.shape_cast %12 : vector<1x32x256xbf16> to vector<32x256xbf16>
    %cst_17 = arith.constant dense<0.000000e+00> : vector<32x128xf32>
    %14 = tpu.matmul %13, %0, %cst_17 {dimension_numbers = #tpu.dot_dimension_numbers<[1], [0], [0], [1], [0, 0, 1, 1], [], []>} : vector<32x256xbf16>, vector<256x128xbf16>, vector<32x128xf32> -> vector<32x128xf32>
    %15 = arith.maximumf %11, %14 : vector<32x128xf32>
    %16 = arith.maximumf %8, %15 : vector<32x128xf32>
    %17 = vector.broadcast %1 : vector<1x128xf32> to vector<32x128xf32>
    %18 = arith.addf %16, %17 : vector<32x128xf32>
    %cst_18 = arith.constant 0.000000e+00 : f32
    %19 = vector.broadcast %cst_18 : f32 to vector<32x128xf32>
    %20 = arith.maximumf %18, %19 : vector<32x128xf32>
    %21 = arith.truncf %20 : vector<32x128xf32> to vector<32x128xbf16>
    %c0_19 = arith.constant 0 : index
    %c0_20 = arith.constant 0 : index
    %c0_21 = arith.constant 0 : index
    %22 = vector.load %arg7[%c0_19, %c0_20, %c0_21] : memref<1x32x128xbf16, #tpu.memory_space<vmem>>, vector<1x32x128xbf16>
    %23 = vector.shape_cast %22 : vector<1x32x128xbf16> to vector<32x128xbf16>
    %24 = vector.shape_cast %21 : vector<32x128xbf16> to vector<1x32x128xbf16>
    tpu.vector_store %arg7[%c0_19, %c0_20, %c0_21], %24 {strides = array<i32>} : memref<1x32x128xbf16, #tpu.memory_space<vmem>>, vector<1x32x128xbf16>,
    return
  }
  func.func @transform_0(%arg0: i32) -> (i32, i32, i32) {
    %c0_i32 = arith.constant 0 : i32
    %c0_i32_0 = arith.constant 0 : i32
    %c0_i32_1 = arith.constant 0 : i32
    return %arg0, %c0_i32, %c0_i32_0 : i32, i32, i32
  }
  func.func @transform_1(%arg0: i32) -> (i32, i32, i32) {
    %c0_i32 = arith.constant 0 : i32
    %c0_i32_0 = arith.constant 0 : i32
    %c0_i32_1 = arith.constant 0 : i32
    return %arg0, %c0_i32, %c0_i32_0 : i32, i32, i32
  }
  func.func @transform_2(%arg0: i32) -> (i32, i32, i32) {
    %c0_i32 = arith.constant 0 : i32
    %c0_i32_0 = arith.constant 0 : i32
    %c0_i32_1 = arith.constant 0 : i32
    return %arg0, %c0_i32, %c0_i32_0 : i32, i32, i32
  }
  func.func @transform_3(%arg0: i32) -> (i32, i32, i32) {
    %c0_i32 = arith.constant 0 : i32
    %c0_i32_0 = arith.constant 0 : i32
    %c0_i32_1 = arith.constant 0 : i32
    return %arg0, %c0_i32, %c0_i32_0 : i32, i32, i32
  }
  func.func @transform_4(%arg0: i32) -> (i32, i32) {
    %c0_i32 = arith.constant 0 : i32
    %c0_i32_0 = arith.constant 0 : i32
    %c0_i32_1 = arith.constant 0 : i32
    return %c0_i32, %c0_i32_0 : i32, i32
  }
  func.func @transform_5(%arg0: i32) -> (i32, i32) {
    %c0_i32 = arith.constant 0 : i32
    %c0_i32_0 = arith.constant 0 : i32
    %c0_i32_1 = arith.constant 0 : i32
    return %c0_i32, %c0_i32_0 : i32, i32
  }
  func.func @transform_6(%arg0: i32) -> (i32, i32, i32) {
    %c0_i32 = arith.constant 0 : i32
    %c0_i32_0 = arith.constant 0 : i32
    %c0_i32_1 = arith.constant 0 : i32
    return %arg0, %c0_i32, %c0_i32_0 : i32, i32, i32
  }
}

module attributes {stable_mosaic.version = 11 : i64} {
  func.func @fc_stack_kernel(%arg0: i32, %arg1: memref<8x4096xbf16, #tpu.memory_space<vmem>>, %arg2: memref<4096x128xbf16, #tpu.memory_space<vmem>>, %arg3: memref<1x128xf32, #tpu.memory_space<vmem>>, %arg4: memref<128x128xbf16, #tpu.memory_space<vmem>>, %arg5: memref<1x128xf32, #tpu.memory_space<vmem>>, %arg6: memref<128x128xbf16, #tpu.memory_space<vmem>>, %arg7: memref<1x128xf32, #tpu.memory_space<vmem>>, %arg8: memref<8x128xf32, #tpu.memory_space<vmem>>) attributes {dimension_semantics = [#tpu.dimension_semantics<arbitrary>], iteration_bounds = array<i64: 1>, scalar_prefetch = 0 : i64, scratch_operands = 0 : i64, tpu.core_type = #tpu.core_type<tc>, window_params = [{pipeline_mode = #tpu.pipeline_mode<synchronous>, transform_indices = @transform_0, window_bounds = array<i64: 8, 4096>}, {pipeline_mode = #tpu.pipeline_mode<synchronous>, transform_indices = @transform_1, window_bounds = array<i64: 4096, 128>}, {pipeline_mode = #tpu.pipeline_mode<synchronous>, transform_indices = @transform_2, window_bounds = array<i64: 1, 128>}, {pipeline_mode = #tpu.pipeline_mode<synchronous>, transform_indices = @transform_3, window_bounds = array<i64: 128, 128>}, {pipeline_mode = #tpu.pipeline_mode<synchronous>, transform_indices = @transform_4, window_bounds = array<i64: 1, 128>}, {pipeline_mode = #tpu.pipeline_mode<synchronous>, transform_indices = @transform_5, window_bounds = array<i64: 128, 128>}, {pipeline_mode = #tpu.pipeline_mode<synchronous>, transform_indices = @transform_6, window_bounds = array<i64: 1, 128>}, {pipeline_mode = #tpu.pipeline_mode<synchronous>, transform_indices = @transform_7, window_bounds = array<i64: 8, 128>}]} {
    %c0 = arith.constant 0 : index
    %c0_0 = arith.constant 0 : index
    %0 = vector.load %arg1[%c0, %c0_0] : memref<8x4096xbf16, #tpu.memory_space<vmem>>, vector<8x4096xbf16>
    %c0_1 = arith.constant 0 : index
    %c0_2 = arith.constant 0 : index
    %1 = vector.load %arg2[%c0_1, %c0_2] : memref<4096x128xbf16, #tpu.memory_space<vmem>>, vector<4096x128xbf16>
    %cst = arith.constant dense<0.000000e+00> : vector<8x128xf32>
    %2 = tpu.matmul %0, %1, %cst {dimension_numbers = #tpu.dot_dimension_numbers<[1], [0], [0], [1], [0, 0, 1, 1], [], []>} : vector<8x4096xbf16>, vector<4096x128xbf16>, vector<8x128xf32> -> vector<8x128xf32>
    %c0_3 = arith.constant 0 : index
    %c0_4 = arith.constant 0 : index
    %3 = vector.load %arg3[%c0_3, %c0_4] : memref<1x128xf32, #tpu.memory_space<vmem>>, vector<1x128xf32>
    %4 = vector.broadcast %3 : vector<1x128xf32> to vector<8x128xf32>
    %5 = arith.addf %2, %4 : vector<8x128xf32>
    %cst_5 = arith.constant 0.000000e+00 : f32
    %6 = vector.broadcast %cst_5 : f32 to vector<8x128xf32>
    %7 = arith.maximumf %5, %6 : vector<8x128xf32>
    %8 = arith.truncf %7 : vector<8x128xf32> to vector<8x128xbf16>
    %c0_6 = arith.constant 0 : index
    %c0_7 = arith.constant 0 : index
    %9 = vector.load %arg4[%c0_6, %c0_7] : memref<128x128xbf16, #tpu.memory_space<vmem>>, vector<128x128xbf16>
    %cst_8 = arith.constant dense<0.000000e+00> : vector<8x128xf32>
    %10 = tpu.matmul %8, %9, %cst_8 {dimension_numbers = #tpu.dot_dimension_numbers<[1], [0], [0], [1], [0, 0, 1, 1], [], []>} : vector<8x128xbf16>, vector<128x128xbf16>, vector<8x128xf32> -> vector<8x128xf32>
    %c0_9 = arith.constant 0 : index
    %c0_10 = arith.constant 0 : index
    %11 = vector.load %arg5[%c0_9, %c0_10] : memref<1x128xf32, #tpu.memory_space<vmem>>, vector<1x128xf32>
    %12 = vector.broadcast %11 : vector<1x128xf32> to vector<8x128xf32>
    %13 = arith.addf %10, %12 : vector<8x128xf32>
    %cst_11 = arith.constant 0.000000e+00 : f32
    %14 = vector.broadcast %cst_11 : f32 to vector<8x128xf32>
    %15 = arith.maximumf %13, %14 : vector<8x128xf32>
    %16 = arith.truncf %15 : vector<8x128xf32> to vector<8x128xbf16>
    %c0_12 = arith.constant 0 : index
    %c0_13 = arith.constant 0 : index
    %17 = vector.load %arg6[%c0_12, %c0_13] : memref<128x128xbf16, #tpu.memory_space<vmem>>, vector<128x128xbf16>
    %cst_14 = arith.constant dense<0.000000e+00> : vector<8x128xf32>
    %18 = tpu.matmul %16, %17, %cst_14 {dimension_numbers = #tpu.dot_dimension_numbers<[1], [0], [0], [1], [0, 0, 1, 1], [], []>} : vector<8x128xbf16>, vector<128x128xbf16>, vector<8x128xf32> -> vector<8x128xf32>
    %c0_15 = arith.constant 0 : index
    %c0_16 = arith.constant 0 : index
    %19 = vector.load %arg7[%c0_15, %c0_16] : memref<1x128xf32, #tpu.memory_space<vmem>>, vector<1x128xf32>
    %20 = vector.broadcast %19 : vector<1x128xf32> to vector<8x128xf32>
    %21 = arith.addf %18, %20 : vector<8x128xf32>
    %c0_17 = arith.constant 0 : index
    %c0_18 = arith.constant 0 : index
    %22 = vector.load %arg8[%c0_17, %c0_18] : memref<8x128xf32, #tpu.memory_space<vmem>>, vector<8x128xf32>
    tpu.vector_store %arg8[%c0_17, %c0_18], %21 {strides = array<i32>} : memref<8x128xf32, #tpu.memory_space<vmem>>, vector<8x128xf32>,
    return
  }
  func.func @transform_0(%arg0: i32) -> (i32, i32) {
    %c0_i32 = arith.constant 0 : i32
    %c0_i32_0 = arith.constant 0 : i32
    %c0_i32_1 = arith.constant 0 : i32
    return %c0_i32, %c0_i32_0 : i32, i32
  }
  func.func @transform_1(%arg0: i32) -> (i32, i32) {
    %c0_i32 = arith.constant 0 : i32
    %c0_i32_0 = arith.constant 0 : i32
    %c0_i32_1 = arith.constant 0 : i32
    return %c0_i32, %c0_i32_0 : i32, i32
  }
  func.func @transform_2(%arg0: i32) -> (i32, i32) {
    %c0_i32 = arith.constant 0 : i32
    %c0_i32_0 = arith.constant 0 : i32
    %c0_i32_1 = arith.constant 0 : i32
    return %c0_i32, %c0_i32_0 : i32, i32
  }
  func.func @transform_3(%arg0: i32) -> (i32, i32) {
    %c0_i32 = arith.constant 0 : i32
    %c0_i32_0 = arith.constant 0 : i32
    %c0_i32_1 = arith.constant 0 : i32
    return %c0_i32, %c0_i32_0 : i32, i32
  }
  func.func @transform_4(%arg0: i32) -> (i32, i32) {
    %c0_i32 = arith.constant 0 : i32
    %c0_i32_0 = arith.constant 0 : i32
    %c0_i32_1 = arith.constant 0 : i32
    return %c0_i32, %c0_i32_0 : i32, i32
  }
  func.func @transform_5(%arg0: i32) -> (i32, i32) {
    %c0_i32 = arith.constant 0 : i32
    %c0_i32_0 = arith.constant 0 : i32
    %c0_i32_1 = arith.constant 0 : i32
    return %c0_i32, %c0_i32_0 : i32, i32
  }
  func.func @transform_6(%arg0: i32) -> (i32, i32) {
    %c0_i32 = arith.constant 0 : i32
    %c0_i32_0 = arith.constant 0 : i32
    %c0_i32_1 = arith.constant 0 : i32
    return %c0_i32, %c0_i32_0 : i32, i32
  }
  func.func @transform_7(%arg0: i32) -> (i32, i32) {
    %c0_i32 = arith.constant 0 : i32
    %c0_i32_0 = arith.constant 0 : i32
    %c0_i32_1 = arith.constant 0 : i32
    return %c0_i32, %c0_i32_0 : i32, i32
  }
}

</mosaic_0001>

<bundles_post_ra>
// kernel: lenet_forward.3
= control target key start
LH: loop header
LB: loop body
LE: loop exit
PB: predicated region body
PF: predicated region fallthrough
CT: control target
= control target key end

     0   :  { %s1758_s21 = smov 0   ;;  %s1924_s0 = inlined_call_operand.vmem [shape: bf16[2,200,128], index: 0, kind: input, shape index: {}]   ;;  %s1925_s1 = inlined_call_operand.vmem [shape: bf16[2,200,128], index: 1, kind: input, shape index: {}]   ;;  %s1926_s2 = inlined_call_operand.vmem [shape: bf16[2,200,128], index: 2, kind: input, shape index: {}]   ;;  %s1927_s3 = inlined_call_operand.vmem [shape: bf16[2,200,128], index: 3, kind: input, shape index: {}]   ;;  %s1928_s4 = inlined_call_operand.vmem [shape: bf16[128,128], index: 4, kind: input, shape index: {}]   ;;  %s1929_s5 = inlined_call_operand.vmem [shape: f32[1,128], index: 5, kind: input, shape index: {}]   ;;  %s1930_s6 = inlined_call_operand.vmem [shape: bf16[2,200,128], index: 6, kind: output, shape index: {}]  }
   0x1 LB: > { %s1342_s22 = sadd.s32 4294967295, %s1721_s21   ;;  %p1346_p0 = scmp.ge.s32.totalorder %s1721_s21, 1  ;;  %s1721_s21 = sphi %s1758_s21, %s16_s21  }
   0x2   : > { %p242_p1 = scmp.lt.s32.totalorder %s1721_s21, 3 }
   0x4   : > { %p243_p2 = pnand %p1346_p0, %p242_p1 }
   0x5   : > { %p287_p3 = scmp.lt.s32.totalorder (!%p243_p2), %s1342_s22, 1 }
   0x6   : > { %246 = sbr.rel (%p243_p2) target bundleno = 379 (0x17b), region = 44 }
   0xb   : > { %v1585_v0 = vld [vmem:[%s1928_s4 + $0x38] sm:$0xff]  ;;  %v1584_v1 = vld [vmem:[%s1928_s4 + $0x30] sm:$0xff]  ;;  %v1583_v2 = vld [vmem:[%s1928_s4 + $0x28] sm:$0xff]  ;;  %s1932_s22 = smov (!%p287_p3, %s1342_s22), 1 }
   0xc   : > { %478 = vmatpush.bf16.msra.mxu0 %v1585_v0  ;;  %652 = vmatpush.bf16.msra.mxu1 %v1585_v0  ;;  %v1582_v3 = vld [vmem:[%s1928_s4 + $0x20] sm:$0xff]  ;;  %v1581_v4 = vld [vmem:[%s1928_s4 + $0x18] sm:$0xff]  ;;  %v1580_v5 = vld [vmem:[%s1928_s4 + $0x10] sm:$0xff]  ;;  %s1791_s13 = smul.u32 100, %s1932_s22 }
   0xd   : > { %851 = vmatpush.bf16.msra.mxu2 %v1585_v0  ;;  %1025 = vmatpush.bf16.msra.mxu3 %v1585_v0  ;;  %v1579_v6 = vld [vmem:[%s1928_s4 + $0x8] sm:$0xff]  ;;  %v1578_v7 = vld [vmem:[%s1928_s4] sm:$0xff] }
   0xe   : > { %s1800_s18 = scalar_lea.vmem %s1924_s0, %s1791_s13  ;;  %s1806_s22 = scalar_lea.vmem %s1925_s1, %s1791_s13  ;;  %v1859_v53 = vld [vmem:[%s1929_s5] ss:$0 sm:$0xff] }
   0xf   : > { %s1812_s25 = scalar_lea.vmem %s1926_s2, %s1791_s13  ;;  %s1818_s28 = scalar_lea.vmem %s1927_s3, %s1791_s13  ;;  %v1586_v8 = vld [vmem:[%s1800_s18] sm:$0xff]  ;;  %v1587_v12 = vld [vmem:[%s1800_s18 + $0x8] sm:$0xff]  ;;  %v1588_v16 = vld [vmem:[%s1800_s18 + $0x10] sm:$0xff] }
  0x10   : > { %479 = vmatpush.bf16.msra.mxu0 %v1584_v1  ;;  %653 = vmatpush.bf16.msra.mxu1 %v1584_v1  ;;  %v1598_v9 = vld [vmem:[%s1806_s22] sm:$0xff]  ;;  %v1599_v13 = vld [vmem:[%s1806_s22 + $0x8] sm:$0xff]  ;;  %v1600_v17 = vld [vmem:[%s1806_s22 + $0x10] sm:$0xff]  ;;  %s1871_s9 = scalar_lea.vmem %s1930_s6, %s1791_s13 }
  0x11   : > { %852 = vmatpush.bf16.msra.mxu2 %v1584_v1  ;;  %1026 = vmatpush.bf16.msra.mxu3 %v1584_v1  ;;  %v1610_v10 = vld [vmem:[%s1812_s25] sm:$0xff]  ;;  %v1611_v14 = vld [vmem:[%s1812_s25 + $0x8] sm:$0xff]  ;;  %v1612_v18 = vld [vmem:[%s1812_s25 + $0x10] sm:$0xff] }
  0x12   : > { %v1622_v11 = vld [vmem:[%s1818_s28] sm:$0xff]  ;;  %v1623_v15 = vld [vmem:[%s1818_s28 + $0x8] sm:$0xff]  ;;  %v1624_v19 = vld [vmem:[%s1818_s28 + $0x10] sm:$0xff] }
  0x13   : > { %v1589_v20 = vld [vmem:[%s1800_s18 + $0x18] sm:$0xff]  ;;  %v1590_v24 = vld [vmem:[%s1800_s18 + $0x20] sm:$0xff]  ;;  %v1591_v28 = vld [vmem:[%s1800_s18 + $0x28] sm:$0xff] }
  0x14   : > { %480 = vmatpush.bf16.msra.mxu0 %v1583_v2  ;;  %654 = vmatpush.bf16.msra.mxu1 %v1583_v2  ;;  %v1601_v21 = vld [vmem:[%s1806_s22 + $0x18] sm:$0xff]  ;;  %v1602_v25 = vld [vmem:[%s1806_s22 + $0x20] sm:$0xff]  ;;  %v1603_v29 = vld [vmem:[%s1806_s22 + $0x28] sm:$0xff] }
  0x15   : > { %853 = vmatpush.bf16.msra.mxu2 %v1583_v2  ;;  %1027 = vmatpush.bf16.msra.mxu3 %v1583_v2  ;;  %v1613_v22 = vld [vmem:[%s1812_s25 + $0x18] sm:$0xff]  ;;  %v1614_v26 = vld [vmem:[%s1812_s25 + $0x20] sm:$0xff]  ;;  %v1615_v30 = vld [vmem:[%s1812_s25 + $0x28] sm:$0xff] }
  0x16   : > { %v1625_v23 = vld [vmem:[%s1818_s28 + $0x18] sm:$0xff]  ;;  %v1626_v27 = vld [vmem:[%s1818_s28 + $0x20] sm:$0xff]  ;;  %v1627_v31 = vld [vmem:[%s1818_s28 + $0x28] sm:$0xff] }
  0x17   : > { %v1592_v32 = vld [vmem:[%s1800_s18 + $0x30] sm:$0xff]  ;;  %v1593_v36 = vld [vmem:[%s1800_s18 + $0x38] sm:$0xff]  ;;  %v1594_v40 = vld [vmem:[%s1800_s18 + $0x40] sm:$0xff] }
  0x18   : > { %481 = vmatpush.bf16.msra.mxu0 %v1582_v3  ;;  %655 = vmatpush.bf16.msra.mxu1 %v1582_v3  ;;  %v1604_v33 = vld [vmem:[%s1806_s22 + $0x30] sm:$0xff]  ;;  %v1605_v37 = vld [vmem:[%s1806_s22 + $0x38] sm:$0xff]  ;;  %v1606_v41 = vld [vmem:[%s1806_s22 + $0x40] sm:$0xff] }
  0x19   : > { %854 = vmatpush.bf16.msra.mxu2 %v1582_v3  ;;  %1028 = vmatpush.bf16.msra.mxu3 %v1582_v3  ;;  %v1616_v34 = vld [vmem:[%s1812_s25 + $0x30] sm:$0xff]  ;;  %v1617_v38 = vld [vmem:[%s1812_s25 + $0x38] sm:$0xff]  ;;  %v1618_v44 = vld [vmem:[%s1812_s25 + $0x40] sm:$0xff] }
  0x1a   : > { %v1628_v35 = vld [vmem:[%s1818_s28 + $0x30] sm:$0xff]  ;;  %v1629_v39 = vld [vmem:[%s1818_s28 + $0x38] sm:$0xff]  ;;  %v1630_v45 = vld [vmem:[%s1818_s28 + $0x40] sm:$0xff] }
  0x1b   : > { %v1595_v56 = vld [vmem:[%s1800_s18 + $0x48] sm:$0xff] }
  0x1c   : > { %482 = vmatpush.bf16.msra.mxu0 %v1581_v4  ;;  %656 = vmatpush.bf16.msra.mxu1 %v1581_v4  ;;  %v1607_v57 = vld [vmem:[%s1806_s22 + $0x48] sm:$0xff] }
  0x1d   : > { %855 = vmatpush.bf16.msra.mxu2 %v1581_v4  ;;  %1029 = vmatpush.bf16.msra.mxu3 %v1581_v4  ;;  %v1619_v62 = vld [vmem:[%s1812_s25 + $0x48] sm:$0xff] }
  0x1e   : > { %v1631_v63 = vld [vmem:[%s1818_s28 + $0x48] sm:$0xff] }
  0x20   : > { %483 = vmatpush.bf16.msra.mxu0 %v1580_v5  ;;  %657 = vmatpush.bf16.msra.mxu1 %v1580_v5 }
  0x21   : > { %856 = vmatpush.bf16.msra.mxu2 %v1580_v5  ;;  %1030 = vmatpush.bf16.msra.mxu3 %v1580_v5 }
  0x24   : > { %484 = vmatpush.bf16.msra.mxu0 %v1579_v6  ;;  %658 = vmatpush.bf16.msra.mxu1 %v1579_v6 }
  0x25   : > { %857 = vmatpush.bf16.msra.mxu2 %v1579_v6  ;;  %1031 = vmatpush.bf16.msra.mxu3 %v1579_v6 }
  0x28   : > { %485 = vmatpush.bf16.msra.mxu0 %v1578_v7  ;;  %659 = vmatpush.bf16.msra.mxu1 %v1578_v7 }
  0x29   : > { %858 = vmatpush.bf16.msra.mxu2 %v1578_v7  ;;  %1032 = vmatpush.bf16.msra.mxu3 %v1578_v7 }
  0x2b   : > { %486 = vmatmul.bf16.vlgmr.msra.gmra.mxu0 %v1586_v8  ;;  %660 = vmatmul.bf16.vlgmr.msra.gmra.mxu1 %v1598_v9 }
  0x2c   : > { %859 = vmatmul.bf16.vlgmr.msra.gmra.mxu2 %v1610_v10  ;;  %1033 = vmatmul.bf16.vlgmr.msra.gmra.mxu3 %v1622_v11 }
  0x3b   : > { %491 = vmatmul.bf16.gmra.mxu0 %v1587_v12  ;;  %665 = vmatmul.bf16.gmra.mxu1 %v1599_v13 }
  0x3c   : > { %864 = vmatmul.bf16.gmra.mxu2 %v1611_v14  ;;  %1038 = vmatmul.bf16.gmra.mxu3 %v1623_v15  ;;  %v1596_v15 = vld [vmem:[%s1800_s18 + $0x50] sm:$0xff] }
  0x4b   : > { %496 = vmatmul.bf16.gmra.mxu0 %v1588_v16  ;;  %670 = vmatmul.bf16.gmra.mxu1 %v1600_v17  ;;  %v1608_v16 = vld [vmem:[%s1806_s22 + $0x50] sm:$0xff] }
  0x4c   : > { %869 = vmatmul.bf16.gmra.mxu2 %v1612_v18  ;;  %1043 = vmatmul.bf16.gmra.mxu3 %v1624_v19 }
  0x5b   : > { %501 = vmatmul.bf16.gmra.mxu0 %v1589_v20  ;;  %675 = vmatmul.bf16.gmra.mxu1 %v1601_v21  ;;  %v1620_v21 = vld [vmem:[%s1812_s25 + $0x50] sm:$0xff] }
  0x5c   : > { %874 = vmatmul.bf16.gmra.mxu2 %v1613_v22  ;;  %1048 = vmatmul.bf16.gmra.mxu3 %v1625_v23  ;;  %v1632_v22 = vld [vmem:[%s1818_s28 + $0x50] sm:$0xff] }
  0x6b   : > { %506 = vmatmul.bf16.gmra.mxu0 %v1590_v24  ;;  %680 = vmatmul.bf16.gmra.mxu1 %v1602_v25 }
  0x6c   : > { %879 = vmatmul.bf16.gmra.mxu2 %v1614_v26  ;;  %1053 = vmatmul.bf16.gmra.mxu3 %v1626_v27 }
  0x7b   : > { %511 = vmatmul.bf16.gmra.mxu0 %v1591_v28  ;;  %685 = vmatmul.bf16.gmra.mxu1 %v1603_v29 }
  0x7c   : > { %884 = vmatmul.bf16.gmra.mxu2 %v1615_v30  ;;  %1058 = vmatmul.bf16.gmra.mxu3 %v1627_v31 }
  0x8b   : > { %516 = vmatmul.bf16.gmra.mxu0 %v1592_v32  ;;  %690 = vmatmul.bf16.gmra.mxu1 %v1604_v33 }
  0x8c   : > { %889 = vmatmul.bf16.gmra.mxu2 %v1616_v34  ;;  %1063 = vmatmul.bf16.gmra.mxu3 %v1628_v35 }
  0x9b   : > { %521 = vmatmul.bf16.gmra.mxu0 %v1593_v36  ;;  %695 = vmatmul.bf16.gmra.mxu1 %v1605_v37 }
  0x9c   : > { %894 = vmatmul.bf16.gmra.mxu2 %v1617_v38  ;;  %1068 = vmatmul.bf16.gmra.mxu3 %v1629_v39  ;;  %v1597_v38 = vld [vmem:[%s1800_s18 + $0x58] sm:$0xff] }
  0x9d   : > { %v1609_v39 = vld [vmem:[%s1806_s22 + $0x58] sm:$0xff] }
  0xa8   : > { %v487_v42 = vpop.f32.mrf.mxu0  ;;  %v661_v43 = vpop.f32.mrf.mxu1 }
  0xa9   : > { %v725_v50 = vmax.f32 %v487_v42, %v661_v43 }
  0xab   : > { %526 = vmatmul.bf16.gmra.mxu0 %v1594_v40  ;;  %700 = vmatmul.bf16.gmra.mxu1 %v1606_v41 }
  0xac   : > { %899 = vmatmul.bf16.gmra.mxu2 %v1618_v44  ;;  %1073 = vmatmul.bf16.gmra.mxu3 %v1630_v45  ;;  %v1621_v44 = vld [vmem:[%s1812_s25 + $0x58] sm:$0xff] }
  0xad   : > { %v1633_v45 = vld [vmem:[%s1818_s28 + $0x58] sm:$0xff] }
  0xaf   : > { %v860_v46 = vpop.f32.mrf.mxu2  ;;  %v1034_v47 = vpop.f32.mrf.mxu3 }
  0xb0   : > { %v489_v48 = vpop.f32.mrf.mxu0  ;;  %v663_v49 = vpop.f32.mrf.mxu1  ;;  %v1098_v51 = vmax.f32 %v860_v46, %v1034_v47 }
  0xb1   : > { %v726_v58 = vmax.f32 %v489_v48, %v663_v49 }
  0xb2   : > { %v1123_v52 = vmax.f32 %v725_v50, %v1098_v51 }
  0xb4   : > { %v1151_v0 = vadd.f32 %v1859_v53, %v1123_v52 }
  0xb6   : > { %v1176_v3 = vmax.f32 %v1151_v0, 0.0 }
  0xb7   : > { %v862_v54 = vpop.f32.mrf.mxu2  ;;  %v1036_v55 = vpop.f32.mrf.mxu3 }
  0xb8   : > { %v1099_v59 = vmax.f32 %v862_v54, %v1036_v55  ;;  %v492_v60 = vpop.f32.mrf.mxu0  ;;  %v666_v61 = vpop.f32.mrf.mxu1 }
  0xb9   : > { %v727_v10 = vmax.f32 %v492_v60, %v666_v61  ;;  %v948_v60 = vld [vmem:[%s1818_s28 + $0x60] sm:$0xf] }
  0xba   : > { %v1124_v1 = vmax.f32 %v726_v58, %v1099_v59  ;;  %v575_v58 = vld [vmem:[%s1806_s22 + $0x60] sm:$0xf] }
  0xbb   : > { %531 = vmatmul.bf16.gmra.mxu0 %v1595_v56  ;;  %705 = vmatmul.bf16.gmra.mxu1 %v1607_v57  ;;  %v353_v57 = vld [vmem:[%s1800_s18 + $0x60] sm:$0xf]  ;;  %v625_v0 = vunpack.c.l.b16 %v575_v58 }
  0xbc   : > { %v1152_v2 = vadd.f32 %v1859_v53, %v1124_v1  ;;  %904 = vmatmul.bf16.gmra.mxu2 %v1619_v62  ;;  %1078 = vmatmul.bf16.gmra.mxu3 %v1631_v63  ;;  %v774_v59 = vld [vmem:[%s1812_s25 + $0x60] sm:$0xf]  ;;  %v403_v63 = vunpack.c.l.b16 %v353_v57 }
  0xbd   : > { %v824_v1 = vunpack.c.l.b16 %v774_v59 }
  0xbe   : > { %v1177_v4 = vmax.f32 %v1152_v2, 0.0  ;;  %v998_v2 = vunpack.c.l.b16 %v948_v60 }
  0xbf   : > { %v865_v5 = vpop.f32.mrf.mxu2  ;;  %v1039_v6 = vpop.f32.mrf.mxu3 }
  0xc0   : > { %v1637_v7 = vpack.c.bf16 %v1177_v4, %v1176_v3  ;;  %v494_v8 = vpop.f32.mrf.mxu0  ;;  %v668_v9 = vpop.f32.mrf.mxu1  ;;  %v1100_v11 = vmax.f32 %v865_v5, %v1039_v6  ;;  %v416_v6 = vpack.c.b16 %v403_v63, %v403_v63 }
  0xc1   : > { %v728_v17 = vmax.f32 %v494_v8, %v668_v9 }
  0xc2   : > { %1638 = vst [vmem:[%s1871_s9] sm:$0xff] %v1637_v7   ;;  %v1125_v12 = vmax.f32 %v727_v10, %v1100_v11  ;;  %v638_v7 = vpack.c.b16 %v625_v0, %v625_v0 }
  0xc4   : > { %v1153_v23 = vadd.f32 %v1859_v53, %v1125_v12  ;;  %v837_v12 = vpack.c.b16 %v824_v1, %v824_v1 }
  0xc6   : > { %v1178_v26 = vmax.f32 %v1153_v23, 0.0 }
  0xc7   : > { %v867_v13 = vpop.f32.mrf.mxu2  ;;  %v1041_v14 = vpop.f32.mrf.mxu3 }
  0xc8   : > { %v1101_v18 = vmax.f32 %v867_v13, %v1041_v14  ;;  %v497_v19 = vpop.f32.mrf.mxu0  ;;  %v671_v20 = vpop.f32.mrf.mxu1  ;;  %v1011_v13 = vpack.c.b16 %v998_v2, %v998_v2 }
  0xc9   : > { %v729_v33 = vmax.f32 %v497_v19, %v671_v20 }
  0xca   : > { %v1126_v24 = vmax.f32 %v728_v17, %v1101_v18 }
  0xcb   : > { %536 = vmatmul.bf16.gmra.mxu0 %v1596_v15  ;;  %710 = vmatmul.bf16.gmra.mxu1 %v1608_v16 }
  0xcc   : > { %v1154_v25 = vadd.f32 %v1859_v53, %v1126_v24  ;;  %909 = vmatmul.bf16.gmra.mxu2 %v1620_v21  ;;  %1083 = vmatmul.bf16.gmra.mxu3 %v1632_v22 }
  0xce   : > { %v1179_v27 = vmax.f32 %v1154_v25, 0.0 }
  0xcf   : > { %v870_v28 = vpop.f32.mrf.mxu2  ;;  %v1044_v29 = vpop.f32.mrf.mxu3 }
  0xd0   : > { %v1642_v30 = vpack.c.bf16 %v1179_v27, %v1178_v26  ;;  %v499_v31 = vpop.f32.mrf.mxu0  ;;  %v673_v32 = vpop.f32.mrf.mxu1  ;;  %v1102_v34 = vmax.f32 %v870_v28, %v1044_v29 }
  0xd1   : > { %v730_v40 = vmax.f32 %v499_v31, %v673_v32 }
  0xd2   : > { %1694 = vst [vmem:[%s1871_s9 + $0x8] sm:$0xff] %v1642_v30   ;;  %v1127_v35 = vmax.f32 %v729_v33, %v1102_v34 }
  0xd4   : > { %v1155_v46 = vadd.f32 %v1859_v53, %v1127_v35 }
  0xd6   : > { %v1180_v49 = vmax.f32 %v1155_v46, 0.0 }
  0xd7   : > { %v872_v36 = vpop.f32.mrf.mxu2  ;;  %v1046_v37 = vpop.f32.mrf.mxu3 }
  0xd8   : > { %v1103_v41 = vmax.f32 %v872_v36, %v1046_v37  ;;  %v502_v42 = vpop.f32.mrf.mxu0  ;;  %v676_v43 = vpop.f32.mrf.mxu1 }
  0xd9   : > { %v731_v61 = vmax.f32 %v502_v42, %v676_v43 }
  0xda   : > { %v1128_v47 = vmax.f32 %v730_v40, %v1103_v41 }
  0xdb   : > { %541 = vmatmul.bf16.gmra.mxu0 %v1597_v38  ;;  %715 = vmatmul.bf16.gmra.mxu1 %v1609_v39 }
  0xdc   : > { %v1156_v48 = vadd.f32 %v1859_v53, %v1128_v47  ;;  %914 = vmatmul.bf16.gmra.mxu2 %v1621_v44  ;;  %1088 = vmatmul.bf16.gmra.mxu3 %v1633_v45 }
  0xde   : > { %v1181_v50 = vmax.f32 %v1156_v48, 0.0 }
  0xdf   : > { %v875_v51 = vpop.f32.mrf.mxu2  ;;  %v1049_v52 = vpop.f32.mrf.mxu3 }
  0xe0   : > { %v1647_v54 = vpack.c.bf16 %v1181_v50, %v1180_v49  ;;  %v504_v55 = vpop.f32.mrf.mxu0  ;;  %v678_v56 = vpop.f32.mrf.mxu1  ;;  %v1104_v62 = vmax.f32 %v875_v51, %v1049_v52 }
  0xe1   : > { %v732_v8 = vmax.f32 %v504_v55, %v678_v56 }
  0xe2   : > { %1695 = vst [vmem:[%s1871_s9 + $0x10] sm:$0xff] %v1647_v54   ;;  %v1129_v3 = vmax.f32 %v731_v61, %v1104_v62 }
  0xe4   : > { %v1157_v14 = vadd.f32 %v1859_v53, %v1129_v3 }
  0xe6   : > { %v1182_v17 = vmax.f32 %v1157_v14, 0.0 }
  0xe7   : > { %v877_v4 = vpop.f32.mrf.mxu2  ;;  %v1051_v5 = vpop.f32.mrf.mxu3 }
  0xe8   : > { %v1105_v9 = vmax.f32 %v877_v4, %v1051_v5  ;;  %v507_v10 = vpop.f32.mrf.mxu0  ;;  %v681_v11 = vpop.f32.mrf.mxu1 }
  0xe9   : > { %v733_v24 = vmax.f32 %v507_v10, %v681_v11 }
  0xea   : > { %v1130_v15 = vmax.f32 %v732_v8, %v1105_v9 }
  0xeb   : > { %546 = vmatmul.bf16.gmra.mxu0 %v416_v6  ;;  %720 = vmatmul.bf16.gmra.mxu1 %v638_v7 }
  0xec   : > { %v1158_v16 = vadd.f32 %v1859_v53, %v1130_v15  ;;  %919 = vmatmul.bf16.gmra.mxu2 %v837_v12  ;;  %1093 = vmatmul.bf16.gmra.mxu3 %v1011_v13 }
  0xee   : > { %v1183_v18 = vmax.f32 %v1158_v16, 0.0 }
  0xef   : > { %v880_v19 = vpop.f32.mrf.mxu2  ;;  %v1054_v20 = vpop.f32.mrf.mxu3 }
  0xf0   : > { %v1652_v21 = vpack.c.bf16 %v1183_v18, %v1182_v17  ;;  %v509_v22 = vpop.f32.mrf.mxu0  ;;  %v683_v23 = vpop.f32.mrf.mxu1  ;;  %v1106_v25 = vmax.f32 %v880_v19, %v1054_v20 }
  0xf1   : > { %v734_v29 = vmax.f32 %v509_v22, %v683_v23 }
  0xf2   : > { %1696 = vst [vmem:[%s1871_s9 + $0x18] sm:$0xff] %v1652_v21   ;;  %v1131_v26 = vmax.f32 %v733_v24, %v1106_v25 }
  0xf4   : > { %v1159_v33 = vadd.f32 %v1859_v53, %v1131_v26 }
  0xf6   : > { %v1184_v36 = vmax.f32 %v1159_v33, 0.0 }
  0xf7   : > { %v882_v27 = vpop.f32.mrf.mxu2  ;;  %v1056_v28 = vpop.f32.mrf.mxu3 }
  0xf8   : > { %v1107_v30 = vmax.f32 %v882_v27, %v1056_v28  ;;  %v512_v31 = vpop.f32.mrf.mxu0  ;;  %v686_v32 = vpop.f32.mrf.mxu1 }
  0xf9   : > { %v735_v43 = vmax.f32 %v512_v31, %v686_v32 }
  0xfa   : > { %v1132_v34 = vmax.f32 %v734_v29, %v1107_v30 }
  0xfc   : > { %v1160_v35 = vadd.f32 %v1859_v53, %v1132_v34 }
  0xfe   : > { %v1185_v37 = vmax.f32 %v1160_v35, 0.0 }
  0xff   : > { %v885_v38 = vpop.f32.mrf.mxu2  ;;  %v1059_v39 = vpop.f32.mrf.mxu3 }
 0x100   : > { %v1657_v40 = vpack.c.bf16 %v1185_v37, %v1184_v36  ;;  %v514_v41 = vpop.f32.mrf.mxu0  ;;  %v688_v42 = vpop.f32.mrf.mxu1  ;;  %v1108_v44 = vmax.f32 %v885_v38, %v1059_v39 }
 0x101   : > { %v736_v48 = vmax.f32 %v514_v41, %v688_v42 }
 0x102   : > { %1697 = vst [vmem:[%s1871_s9 + $0x20] sm:$0xff] %v1657_v40   ;;  %v1133_v45 = vmax.f32 %v735_v43, %v1108_v44 }
 0x104   : > { %v1161_v52 = vadd.f32 %v1859_v53, %v1133_v45 }
 0x106   : > { %v1186_v56 = vmax.f32 %v1161_v52, 0.0 }
 0x107   : > { %v887_v46 = vpop.f32.mrf.mxu2  ;;  %v1061_v47 = vpop.f32.mrf.mxu3 }
 0x108   : > { %v1109_v49 = vmax.f32 %v887_v46, %v1061_v47  ;;  %v517_v50 = vpop.f32.mrf.mxu0  ;;  %v691_v51 = vpop.f32.mrf.mxu1 }
 0x109   : > { %v737_v63 = vmax.f32 %v517_v50, %v691_v51 }
 0x10a   : > { %v1134_v54 = vmax.f32 %v736_v48, %v1109_v49 }
 0x10c   : > { %v1162_v55 = vadd.f32 %v1859_v53, %v1134_v54 }
 0x10e   : > { %v1187_v57 = vmax.f32 %v1162_v55, 0.0 }
 0x10f   : > { %v890_v58 = vpop.f32.mrf.mxu2  ;;  %v1064_v59 = vpop.f32.mrf.mxu3 }
 0x110   : > { %v1662_v60 = vpack.c.bf16 %v1187_v57, %v1186_v56  ;;  %v519_v61 = vpop.f32.mrf.mxu0  ;;  %v693_v62 = vpop.f32.mrf.mxu1  ;;  %v1110_v0 = vmax.f32 %v890_v58, %v1064_v59 }
 0x111   : > { %v738_v4 = vmax.f32 %v519_v61, %v693_v62 }
 0x112   : > { %1698 = vst [vmem:[%s1871_s9 + $0x28] sm:$0xff] %v1662_v60   ;;  %v1135_v1 = vmax.f32 %v737_v63, %v1110_v0 }
 0x114   : > { %v1163_v8 = vadd.f32 %v1859_v53, %v1135_v1 }
 0x116   : > { %v1188_v11 = vmax.f32 %v1163_v8, 0.0 }
 0x117   : > { %v892_v2 = vpop.f32.mrf.mxu2  ;;  %v1066_v3 = vpop.f32.mrf.mxu3 }
 0x118   : > { %v1111_v5 = vmax.f32 %v892_v2, %v1066_v3  ;;  %v522_v6 = vpop.f32.mrf.mxu0  ;;  %v696_v7 = vpop.f32.mrf.mxu1 }
 0x119   : > { %v739_v18 = vmax.f32 %v522_v6, %v696_v7 }
 0x11a   : > { %v1136_v9 = vmax.f32 %v738_v4, %v1111_v5 }
 0x11c   : > { %v1164_v10 = vadd.f32 %v1859_v53, %v1136_v9 }
 0x11e   : > { %v1189_v12 = vmax.f32 %v1164_v10, 0.0 }
 0x11f   : > { %v895_v13 = vpop.f32.mrf.mxu2  ;;  %v1069_v14 = vpop.f32.mrf.mxu3 }
 0x120   : > { %v1667_v15 = vpack.c.bf16 %v1189_v12, %v1188_v11  ;;  %v524_v16 = vpop.f32.mrf.mxu0  ;;  %v698_v17 = vpop.f32.mrf.mxu1  ;;  %v1112_v19 = vmax.f32 %v895_v13, %v1069_v14 }
 0x121   : > { %v740_v23 = vmax.f32 %v524_v16, %v698_v17 }
 0x122   : > { %1699 = vst [vmem:[%s1871_s9 + $0x30] sm:$0xff] %v1667_v15   ;;  %v1137_v20 = vmax.f32 %v739_v18, %v1112_v19 }
 0x124   : > { %v1165_v27 = vadd.f32 %v1859_v53, %v1137_v20 }
 0x126   : > { %v1190_v30 = vmax.f32 %v1165_v27, 0.0 }
 0x127   : > { %v897_v21 = vpop.f32.mrf.mxu2  ;;  %v1071_v22 = vpop.f32.mrf.mxu3 }
 0x128   : > { %v1113_v24 = vmax.f32 %v897_v21, %v1071_v22  ;;  %v527_v25 = vpop.f32.mrf.mxu0  ;;  %v701_v26 = vpop.f32.mrf.mxu1 }
 0x129   : > { %v741_v37 = vmax.f32 %v527_v25, %v701_v26 }
 0x12a   : > { %v1138_v28 = vmax.f32 %v740_v23, %v1113_v24 }
 0x12c   : > { %v1166_v29 = vadd.f32 %v1859_v53, %v1138_v28 }
 0x12e   : > { %v1191_v31 = vmax.f32 %v1166_v29, 0.0 }
 0x12f   : > { %v900_v32 = vpop.f32.mrf.mxu2  ;;  %v1074_v33 = vpop.f32.mrf.mxu3 }
 0x130   : > { %v1672_v34 = vpack.c.bf16 %v1191_v31, %v1190_v30  ;;  %v529_v35 = vpop.f32.mrf.mxu0  ;;  %v703_v36 = vpop.f32.mrf.mxu1  ;;  %v1114_v38 = vmax.f32 %v900_v32, %v1074_v33 }
 0x131   : > { %v742_v42 = vmax.f32 %v529_v35, %v703_v36 }
 0x132   : > { %1700 = vst [vmem:[%s1871_s9 + $0x38] sm:$0xff] %v1672_v34   ;;  %v1139_v39 = vmax.f32 %v741_v37, %v1114_v38 }
 0x134   : > { %v1167_v46 = vadd.f32 %v1859_v53, %v1139_v39 }
 0x136   : > { %v1192_v49 = vmax.f32 %v1167_v46, 0.0 }
 0x137   : > { %v902_v40 = vpop.f32.mrf.mxu2  ;;  %v1076_v41 = vpop.f32.mrf.mxu3 }
 0x138   : > { %v1115_v43 = vmax.f32 %v902_v40, %v1076_v41  ;;  %v532_v44 = vpop.f32.mrf.mxu0  ;;  %v706_v45 = vpop.f32.mrf.mxu1 }
 0x139   : > { %v743_v57 = vmax.f32 %v532_v44, %v706_v45 }
 0x13a   : > { %v1140_v47 = vmax.f32 %v742_v42, %v1115_v43 }
 0x13c   : > { %v1168_v48 = vadd.f32 %v1859_v53, %v1140_v47 }
 0x13e   : > { %v1193_v50 = vmax.f32 %v1168_v48, 0.0 }
 0x13f   : > { %v905_v51 = vpop.f32.mrf.mxu2  ;;  %v1079_v52 = vpop.f32.mrf.mxu3 }
 0x140   : > { %v1677_v54 = vpack.c.bf16 %v1193_v50, %v1192_v49  ;;  %v534_v55 = vpop.f32.mrf.mxu0  ;;  %v708_v56 = vpop.f32.mrf.mxu1  ;;  %v1116_v58 = vmax.f32 %v905_v51, %v1079_v52 }
 0x141   : > { %v744_v62 = vmax.f32 %v534_v55, %v708_v56 }
 0x142   : > { %1701 = vst [vmem:[%s1871_s9 + $0x40] sm:$0xff] %v1677_v54   ;;  %v1141_v59 = vmax.f32 %v743_v57, %v1116_v58 }
 0x144   : > { %v1169_v2 = vadd.f32 %v1859_v53, %v1141_v59 }
 0x146   : > { %v1194_v5 = vmax.f32 %v1169_v2, 0.0 }
 0x147   : > { %v907_v60 = vpop.f32.mrf.mxu2  ;;  %v1081_v61 = vpop.f32.mrf.mxu3 }
 0x148   : > { %v1117_v63 = vmax.f32 %v907_v60, %v1081_v61  ;;  %v537_v0 = vpop.f32.mrf.mxu0  ;;  %v711_v1 = vpop.f32.mrf.mxu1 }
 0x149   : > { %v745_v12 = vmax.f32 %v537_v0, %v711_v1 }
 0x14a   : > { %v1142_v3 = vmax.f32 %v744_v62, %v1117_v63 }
 0x14c   : > { %v1170_v4 = vadd.f32 %v1859_v53, %v1142_v3 }
 0x14e   : > { %v1195_v6 = vmax.f32 %v1170_v4, 0.0 }
 0x14f   : > { %v910_v7 = vpop.f32.mrf.mxu2  ;;  %v1084_v8 = vpop.f32.mrf.mxu3 }
 0x150   : > { %v1682_v9 = vpack.c.bf16 %v1195_v6, %v1194_v5  ;;  %v539_v10 = vpop.f32.mrf.mxu0  ;;  %v713_v11 = vpop.f32.mrf.mxu1  ;;  %v1118_v13 = vmax.f32 %v910_v7, %v1084_v8 }
 0x151   : > { %v746_v17 = vmax.f32 %v539_v10, %v713_v11 }
 0x152   : > { %1702 = vst [vmem:[%s1871_s9 + $0x48] sm:$0xff] %v1682_v9   ;;  %v1143_v14 = vmax.f32 %v745_v12, %v1118_v13 }
 0x154   : > { %v1171_v21 = vadd.f32 %v1859_v53, %v1143_v14 }
 0x156   : > { %v1196_v24 = vmax.f32 %v1171_v21, 0.0 }
 0x157   : > { %v912_v15 = vpop.f32.mrf.mxu2  ;;  %v1086_v16 = vpop.f32.mrf.mxu3 }
 0x158   : > { %v1119_v18 = vmax.f32 %v912_v15, %v1086_v16  ;;  %v542_v19 = vpop.f32.mrf.mxu0  ;;  %v716_v20 = vpop.f32.mrf.mxu1 }
 0x159   : > { %v747_v31 = vmax.f32 %v542_v19, %v716_v20 }
 0x15a   : > { %v1144_v22 = vmax.f32 %v746_v17, %v1119_v18 }
 0x15c   : > { %v1172_v23 = vadd.f32 %v1859_v53, %v1144_v22 }
 0x15e   : > { %v1197_v25 = vmax.f32 %v1172_v23, 0.0 }
 0x15f   : > { %v915_v26 = vpop.f32.mrf.mxu2  ;;  %v1089_v27 = vpop.f32.mrf.mxu3 }
 0x160   : > { %v1687_v28 = vpack.c.bf16 %v1197_v25, %v1196_v24  ;;  %v544_v29 = vpop.f32.mrf.mxu0  ;;  %v718_v30 = vpop.f32.mrf.mxu1  ;;  %v1120_v32 = vmax.f32 %v915_v26, %v1089_v27 }
 0x161   : > { %v748_v36 = vmax.f32 %v544_v29, %v718_v30 }
 0x162   : > { %1703 = vst [vmem:[%s1871_s9 + $0x50] sm:$0xff] %v1687_v28   ;;  %v1145_v33 = vmax.f32 %v747_v31, %v1120_v32 }
 0x164   : > { %v1173_v40 = vadd.f32 %v1859_v53, %v1145_v33 }
 0x166   : > { %v1198_v43 = vmax.f32 %v1173_v40, 0.0 }
 0x167   : > { %v917_v34 = vpop.f32.mrf.mxu2  ;;  %v1091_v35 = vpop.f32.mrf.mxu3 }
 0x168   : > { %v1121_v37 = vmax.f32 %v917_v34, %v1091_v35  ;;  %v547_v38 = vpop.f32.mrf.mxu0  ;;  %v721_v39 = vpop.f32.mrf.mxu1 }
 0x169   : > { %v749_v45 = vmax.f32 %v547_v38, %v721_v39 }
 0x16a   : > { %v1146_v41 = vmax.f32 %v748_v36, %v1121_v37 }
 0x16c   : > { %v1174_v42 = vadd.f32 %v1859_v53, %v1146_v41 }
 0x16e   : > { %v1199_v44 = vmax.f32 %v1174_v42, 0.0 }
 0x16f   : > { %v920_v46 = vpop.f32.mrf.mxu2  ;;  %v1094_v47 = vpop.f32.mrf.mxu3 }
 0x170   : > { %v1692_v48 = vpack.c.bf16 %v1199_v44, %v1198_v43  ;;  %v1122_v49 = vmax.f32 %v920_v46, %v1094_v47  ;;  %v549_v50 = vpop.f32.mrf.mxu0  ;;  %v723_v51 = vpop.f32.mrf.mxu1 }
 0x172   : > { %1704 = vst [vmem:[%s1871_s9 + $0x58] sm:$0xff] %v1692_v48   ;;  %v1147_v52 = vmax.f32 %v749_v45, %v1122_v49 }
 0x174   : > { %v1175_v54 = vadd.f32 %v1859_v53, %v1147_v52 }
 0x176   : > { %v1200_v55 = vmax.f32 %v1175_v54, 0.0 }
 0x177   : > { %v922_v56 = vpop.f32.mrf.mxu2  ;;  %v1096_v57 = vpop.f32.mrf.mxu3 }
 0x178   : > { %v1225_v58 = vpack.c.bf16 %v1200_v55, %v1200_v55 }
 0x17a   : > { %1250 = vst [vmem:[%s1871_s9 + $0x60] sm:$0xf] %v1225_v58 }
 0x17b PF: > { %s16_s21 = sadd.s32 1, %s1721_s21  }
 0x17c   : > { %p13_p4 = scmp.ge.s32.totalorder %s16_s21, 4  }
 0x17e   :  { %15 = sbr.rel (!%p13_p4) target bundleno = 1 (0x1), region = 83 }

// kernel: lenet_forward.4
= control target key start
LH: loop header
LB: loop body
LE: loop exit
PB: predicated region body
PF: predicated region fallthrough
CT: control target
= control target key end

     0   :  { %s1056_s21 = smov 0   ;;  %s1263_s0 = inlined_call_operand.vmem [shape: bf16[2,32,256], index: 0, kind: input, shape index: {}]   ;;  %s1264_s1 = inlined_call_operand.vmem [shape: bf16[2,32,256], index: 1, kind: input, shape index: {}]   ;;  %s1265_s2 = inlined_call_operand.vmem [shape: bf16[2,32,256], index: 2, kind: input, shape index: {}]   ;;  %s1266_s3 = inlined_call_operand.vmem [shape: bf16[2,32,256], index: 3, kind: input, shape index: {}]   ;;  %s1267_s4 = inlined_call_operand.vmem [shape: bf16[256,128], index: 4, kind: input, shape index: {}]   ;;  %s1268_s5 = inlined_call_operand.vmem [shape: f32[1,128], index: 5, kind: input, shape index: {}]   ;;  %s1269_s6 = inlined_call_operand.vmem [shape: bf16[2,32,128], index: 6, kind: output, shape index: {}]  }
   0x1 LB: > { %s811_s22 = sadd.s32 4294967295, %s1019_s21   ;;  %p815_p0 = scmp.ge.s32.totalorder %s1019_s21, 1  ;;  %s1019_s21 = sphi %s1056_s21, %s16_s21  }
   0x2   : > { %p242_p1 = scmp.lt.s32.totalorder %s1019_s21, 3 }
   0x4   : > { %p243_p2 = pnand %p815_p0, %p242_p1 }
   0x5   : > { %p287_p3 = scmp.lt.s32.totalorder (!%p243_p2), %s811_s22, 1 }
   0x6   : > { %246 = sbr.rel (%p243_p2) target bundleno = 247 (0xf7), region = 44 }
   0xb   : > { %v1067_v0 = vld [vmem:[%s1267_s4 + $0x38] sm:$0xff]  ;;  %v1079_v2 = vld [vmem:[%s1267_s4 + $0x30] sm:$0xff]  ;;  %v1093_v4 = vld [vmem:[%s1267_s4 + $0x28] sm:$0xff]  ;;  %s1271_s22 = smov (!%p287_p3, %s811_s22), 1 }
   0xc   : > { %v1072_v1 = vld [vmem:[%s1267_s4 + $0x78] sm:$0xff]  ;;  %465 = vmatpush.bf16.msra.mxu0 %v1067_v0  ;;  %v1084_v3 = vld [vmem:[%s1267_s4 + $0x70] sm:$0xff]  ;;  %527 = vmatpush.bf16.msra.mxu2 %v1067_v0  ;;  %v1098_v5 = vld [vmem:[%s1267_s4 + $0x68] sm:$0xff]  ;;  %s1151_s25 = sshll.u32 %s1271_s22, 5  ;;  %s960_s26 = sshll.u32 %s1271_s22, 4 }
   0xd   : > { %484 = vmatpush.bf16.msra.mxu1 %v1072_v1  ;;  %546 = vmatpush.bf16.msra.mxu3 %v1072_v1  ;;  %v1107_v6 = vld [vmem:[%s1267_s4 + $0x20] sm:$0xff]  ;;  %v1123_v8 = vld [vmem:[%s1267_s4 + $0x18] sm:$0xff]  ;;  %v1141_v10 = vld [vmem:[%s1267_s4 + $0x10] sm:$0xff]  ;;  %s1169_s8 = scalar_lea.vmem %s1263_s0, %s1151_s25  ;;  %s1177_s11 = scalar_lea.vmem %s1264_s1, %s1151_s25 }
   0xe   : > { %v1112_v7 = vld [vmem:[%s1267_s4 + $0x60] sm:$0xff]  ;;  %v1128_v9 = vld [vmem:[%s1267_s4 + $0x58] sm:$0xff]  ;;  %v1146_v11 = vld [vmem:[%s1267_s4 + $0x50] sm:$0xff]  ;;  %s301_s18 = scalar_lea.vmem %s1265_s2, %s1151_s25  ;;  %s306_s23 = scalar_lea.vmem %s1266_s3, %s1151_s25 }
   0xf   : > { %v1158_v12 = vld [vmem:[%s1267_s4 + $0x8] sm:$0xff]  ;;  %v1182_v14 = vld [vmem:[%s1267_s4] sm:$0xff]  ;;  %v836_v28 = vld [vmem:[%s1169_s8 + $0x10] sm:$0xf]  ;;  %s311_s29 = scalar_lea.vmem %s1269_s6, %s960_s26 }
  0x10   : > { %466 = vmatpush.bf16.msra.mxu0 %v1079_v2  ;;  %528 = vmatpush.bf16.msra.mxu2 %v1079_v2  ;;  %v1163_v13 = vld [vmem:[%s1267_s4 + $0x48] sm:$0xff]  ;;  %v1187_v15 = vld [vmem:[%s1267_s4 + $0x40] sm:$0xff]  ;;  %v980_v29 = vld [vmem:[%s1169_s8 + $0x14] sm:$0xf0] }
  0x11   : > { %485 = vmatpush.bf16.msra.mxu1 %v1084_v3  ;;  %547 = vmatpush.bf16.msra.mxu3 %v1084_v3  ;;  %v828_v16 = vld [vmem:[%s1169_s8] sm:$0xf]  ;;  %v978_v17 = vld [vmem:[%s1169_s8 + $0x4] sm:$0xf0]  ;;  %v977_v18 = vld [vmem:[%s1169_s8 + $0x4] sm:$0xf]  ;;  %v837_v36 = vor.u32 %v980_v29, %v836_v28 }
  0x12   : > { %v830_v19 = vld [vmem:[%s1169_s8 + $0x8] sm:$0xf0]  ;;  %v908_v20 = vld [vmem:[%s1177_s11] sm:$0xf]  ;;  %v982_v21 = vld [vmem:[%s1177_s11 + $0x4] sm:$0xf0]  ;;  %v829_v24 = vor.u32 %v978_v17, %v828_v16 }
  0x13   : > { %v981_v22 = vld [vmem:[%s1177_s11 + $0x4] sm:$0xf]  ;;  %v910_v23 = vld [vmem:[%s1177_s11 + $0x8] sm:$0xf0]  ;;  %v833_v25 = vor.u32 %v977_v18, %v830_v19  ;;  %v909_v26 = vor.u32 %v982_v21, %v908_v20  ;;  %v979_v30 = vld [vmem:[%s1169_s8 + $0x14] sm:$0xf] }
  0x14   : > { %467 = vmatpush.bf16.msra.mxu0 %v1093_v4  ;;  %529 = vmatpush.bf16.msra.mxu2 %v1093_v4  ;;  %v913_v27 = vor.u32 %v981_v22, %v910_v23  ;;  %v838_v31 = vld [vmem:[%s1169_s8 + $0x18] sm:$0xf0]  ;;  %v916_v32 = vld [vmem:[%s1177_s11 + $0x10] sm:$0xf]  ;;  %v984_v33 = vld [vmem:[%s1177_s11 + $0x14] sm:$0xf0] }
  0x15   : > { %486 = vmatpush.bf16.msra.mxu1 %v1098_v5  ;;  %548 = vmatpush.bf16.msra.mxu3 %v1098_v5  ;;  %v983_v34 = vld [vmem:[%s1177_s11 + $0x14] sm:$0xf]  ;;  %v918_v35 = vld [vmem:[%s1177_s11 + $0x18] sm:$0xf0]  ;;  %v841_v37 = vor.u32 %v979_v30, %v838_v31  ;;  %v917_v38 = vor.u32 %v984_v33, %v916_v32  ;;  %v924_v40 = vld [vmem:[%s301_s18] sm:$0xf] }
  0x16   : > { %v921_v39 = vor.u32 %v983_v34, %v918_v35  ;;  %v986_v41 = vld [vmem:[%s301_s18 + $0x4] sm:$0xf0]  ;;  %v985_v42 = vld [vmem:[%s301_s18 + $0x4] sm:$0xf]  ;;  %v926_v43 = vld [vmem:[%s301_s18 + $0x8] sm:$0xf0] }
  0x17   : > { %v940_v44 = vld [vmem:[%s306_s23] sm:$0xf]  ;;  %v990_v45 = vld [vmem:[%s306_s23 + $0x4] sm:$0xf0]  ;;  %v989_v46 = vld [vmem:[%s306_s23 + $0x4] sm:$0xf]  ;;  %v925_v48 = vor.u32 %v986_v41, %v924_v40  ;;  %v929_v49 = vor.u32 %v985_v42, %v926_v43 }
  0x18   : > { %468 = vmatpush.bf16.msra.mxu0 %v1107_v6  ;;  %530 = vmatpush.bf16.msra.mxu2 %v1107_v6  ;;  %v942_v47 = vld [vmem:[%s306_s23 + $0x8] sm:$0xf0]  ;;  %v941_v50 = vor.u32 %v990_v45, %v940_v44  ;;  %v932_v52 = vld [vmem:[%s301_s18 + $0x10] sm:$0xf]  ;;  %v988_v53 = vld [vmem:[%s301_s18 + $0x14] sm:$0xf0] }
  0x19   : > { %487 = vmatpush.bf16.msra.mxu1 %v1112_v7  ;;  %549 = vmatpush.bf16.msra.mxu3 %v1112_v7  ;;  %v945_v51 = vor.u32 %v989_v46, %v942_v47  ;;  %v987_v54 = vld [vmem:[%s301_s18 + $0x14] sm:$0xf]  ;;  %v934_v55 = vld [vmem:[%s301_s18 + $0x18] sm:$0xf0]  ;;  %v948_v56 = vld [vmem:[%s306_s23 + $0x10] sm:$0xf]  ;;  %v933_v60 = vor.u32 %v988_v53, %v932_v52 }
  0x1a   : > { %v992_v57 = vld [vmem:[%s306_s23 + $0x14] sm:$0xf0]  ;;  %v991_v58 = vld [vmem:[%s306_s23 + $0x14] sm:$0xf]  ;;  %v950_v59 = vld [vmem:[%s306_s23 + $0x18] sm:$0xf0]  ;;  %v937_v61 = vor.u32 %v987_v54, %v934_v55 }
  0x1b   : > { %v949_v62 = vor.u32 %v992_v57, %v948_v56  ;;  %v953_v63 = vor.u32 %v991_v58, %v950_v59  ;;  %v1012_v33 = vld [vmem:[%s1268_s5] ss:$0 sm:$0xff] }
  0x1c   : > { %469 = vmatpush.bf16.msra.mxu0 %v1123_v8  ;;  %531 = vmatpush.bf16.msra.mxu2 %v1123_v8 }
  0x1d   : > { %488 = vmatpush.bf16.msra.mxu1 %v1128_v9  ;;  %550 = vmatpush.bf16.msra.mxu3 %v1128_v9 }
  0x20   : > { %470 = vmatpush.bf16.msra.mxu0 %v1141_v10  ;;  %532 = vmatpush.bf16.msra.mxu2 %v1141_v10 }
  0x21   : > { %489 = vmatpush.bf16.msra.mxu1 %v1146_v11  ;;  %551 = vmatpush.bf16.msra.mxu3 %v1146_v11 }
  0x24   : > { %471 = vmatpush.bf16.msra.mxu0 %v1158_v12  ;;  %533 = vmatpush.bf16.msra.mxu2 %v1158_v12 }
  0x25   : > { %490 = vmatpush.bf16.msra.mxu1 %v1163_v13  ;;  %552 = vmatpush.bf16.msra.mxu3 %v1163_v13 }
  0x28   : > { %472 = vmatpush.bf16.msra.mxu0 %v1182_v14  ;;  %534 = vmatpush.bf16.msra.mxu2 %v1182_v14 }
  0x29   : > { %491 = vmatpush.bf16.msra.mxu1 %v1187_v15  ;;  %553 = vmatpush.bf16.msra.mxu3 %v1187_v15 }
  0x2b   : > { %473 = vmatmul.bf16.vlgmr.msra.gmra.mxu0 %v829_v24  ;;  %535 = vmatmul.bf16.vlgmr.msra.gmra.mxu2 %v909_v26 }
  0x2c   : > { %655 = vmatpush.bf16.msrb.mxu2 %v1067_v0  ;;  %492 = vmatmul.bf16.vlgmr.msra.gmra.mxu1 %v833_v25 }
  0x2d   : > { %674 = vmatpush.bf16.msrb.mxu3 %v1072_v1  ;;  %593 = vmatpush.bf16.msrb.mxu0 %v1067_v0 }
  0x2e   : > { %554 = vmatmul.bf16.vlgmr.msra.gmra.mxu3 %v913_v27  ;;  %612 = vmatpush.bf16.msrb.mxu1 %v1072_v1 }
  0x30   : > { %656 = vmatpush.bf16.msrb.mxu2 %v1079_v2 }
  0x31   : > { %675 = vmatpush.bf16.msrb.mxu3 %v1084_v3  ;;  %594 = vmatpush.bf16.msrb.mxu0 %v1079_v2 }
  0x32   : > { %613 = vmatpush.bf16.msrb.mxu1 %v1084_v3 }
  0x34   : > { %657 = vmatpush.bf16.msrb.mxu2 %v1093_v4 }
  0x35   : > { %676 = vmatpush.bf16.msrb.mxu3 %v1098_v5  ;;  %595 = vmatpush.bf16.msrb.mxu0 %v1093_v4 }
  0x36   : > { %614 = vmatpush.bf16.msrb.mxu1 %v1098_v5 }
  0x38   : > { %658 = vmatpush.bf16.msrb.mxu2 %v1107_v6 }
  0x39   : > { %677 = vmatpush.bf16.msrb.mxu3 %v1112_v7  ;;  %596 = vmatpush.bf16.msrb.mxu0 %v1107_v6 }
  0x3a   : > { %615 = vmatpush.bf16.msrb.mxu1 %v1112_v7 }
  0x3b   : > { %478 = vmatmul.bf16.gmra.mxu0 %v837_v36  ;;  %540 = vmatmul.bf16.gmra.mxu2 %v917_v38 }
  0x3c   : > { %659 = vmatpush.bf16.msrb.mxu2 %v1123_v8  ;;  %497 = vmatmul.bf16.gmra.mxu1 %v841_v37 }
  0x3d   : > { %678 = vmatpush.bf16.msrb.mxu3 %v1128_v9  ;;  %597 = vmatpush.bf16.msrb.mxu0 %v1123_v8 }
  0x3e   : > { %559 = vmatmul.bf16.gmra.mxu3 %v921_v39  ;;  %616 = vmatpush.bf16.msrb.mxu1 %v1128_v9 }
  0x40   : > { %660 = vmatpush.bf16.msrb.mxu2 %v1141_v10 }
  0x41   : > { %679 = vmatpush.bf16.msrb.mxu3 %v1146_v11  ;;  %598 = vmatpush.bf16.msrb.mxu0 %v1141_v10 }
  0x42   : > { %617 = vmatpush.bf16.msrb.mxu1 %v1146_v11 }
  0x44   : > { %661 = vmatpush.bf16.msrb.mxu2 %v1158_v12 }
  0x45   : > { %680 = vmatpush.bf16.msrb.mxu3 %v1163_v13  ;;  %599 = vmatpush.bf16.msrb.mxu0 %v1158_v12 }
  0x46   : > { %618 = vmatpush.bf16.msrb.mxu1 %v1163_v13 }
  0x48   : > { %662 = vmatpush.bf16.msrb.mxu2 %v1182_v14 }
  0x49   : > { %681 = vmatpush.bf16.msrb.mxu3 %v1187_v15  ;;  %600 = vmatpush.bf16.msrb.mxu0 %v1182_v14 }
  0x4a   : > { %619 = vmatpush.bf16.msrb.mxu1 %v1187_v15 }
  0x4b   : > { %663 = vmatmul.bf16.vlgmr.msrb.gmra.mxu2 %v941_v50 }
  0x4c   : > { %601 = vmatmul.bf16.vlgmr.msrb.gmra.mxu0 %v925_v48 }
  0x4d   : > { %620 = vmatmul.bf16.vlgmr.msrb.gmra.mxu1 %v929_v49 }
  0x4e   : > { %682 = vmatmul.bf16.vlgmr.msrb.gmra.mxu3 %v945_v51 }
  0x5b   : > { %668 = vmatmul.bf16.gmra.mxu2 %v949_v62 }
  0x5c   : > { %606 = vmatmul.bf16.gmra.mxu0 %v933_v60 }
  0x5d   : > { %625 = vmatmul.bf16.gmra.mxu1 %v937_v61 }
  0x5e   : > { %687 = vmatmul.bf16.gmra.mxu3 %v953_v63 }
  0xa8   : > { %v474_v0 = vpop.f32.mrf.mxu0 }
  0xa9   : > { %v493_v1 = vpop.f32.mrf.mxu1 }
  0xaa   : > { %v494_v24 = vadd.f32 %v493_v1, %v474_v0 }
  0xae   : > { %v536_v2 = vpop.f32.mrf.mxu2 }
  0xb0   : > { %v476_v4 = vpop.f32.mrf.mxu0 }
  0xb1   : > { %v555_v3 = vpop.f32.mrf.mxu3  ;;  %v495_v5 = vpop.f32.mrf.mxu1 }
  0xb2   : > { %v556_v25 = vadd.f32 %v555_v3, %v536_v2  ;;  %v496_v31 = vadd.f32 %v495_v5, %v476_v4 }
  0xb4   : > { %v565_v27 = vmax.f32 %v494_v24, %v556_v25 }
  0xb6   : > { %v538_v6 = vpop.f32.mrf.mxu2 }
  0xb8   : > { %v479_v8 = vpop.f32.mrf.mxu0 }
  0xb9   : > { %v557_v7 = vpop.f32.mrf.mxu3  ;;  %v498_v9 = vpop.f32.mrf.mxu1 }
  0xba   : > { %v558_v28 = vadd.f32 %v557_v7, %v538_v6  ;;  %v499_v49 = vadd.f32 %v498_v9, %v479_v8 }
  0xbc   : > { %v566_v36 = vmax.f32 %v496_v31, %v558_v28 }
  0xbe   : > { %v541_v10 = vpop.f32.mrf.mxu2 }
  0xc0   : > { %v481_v12 = vpop.f32.mrf.mxu0 }
  0xc1   : > { %v560_v11 = vpop.f32.mrf.mxu3  ;;  %v500_v13 = vpop.f32.mrf.mxu1 }
  0xc2   : > { %v561_v50 = vadd.f32 %v560_v11, %v541_v10  ;;  %v501_v59 = vadd.f32 %v500_v13, %v481_v12 }
  0xc4   : > { %v567_v55 = vmax.f32 %v499_v49, %v561_v50 }
  0xc6   : > { %v543_v14 = vpop.f32.mrf.mxu2 }
  0xc9   : > { %v562_v15 = vpop.f32.mrf.mxu3  ;;  %v602_v16 = vpop.f32.mrf.mxu0 }
  0xca   : > { %v621_v17 = vpop.f32.mrf.mxu1  ;;  %v563_v56 = vadd.f32 %v562_v15, %v543_v14 }
  0xcb   : > { %v622_v20 = vadd.f32 %v621_v17, %v602_v16 }
  0xcc   : > { %v568_v63 = vmax.f32 %v501_v59, %v563_v56 }
  0xce   : > { %v664_v18 = vpop.f32.mrf.mxu2 }
  0xd1   : > { %v683_v19 = vpop.f32.mrf.mxu3  ;;  %v604_v22 = vpop.f32.mrf.mxu0 }
  0xd2   : > { %v684_v21 = vadd.f32 %v683_v19, %v664_v18  ;;  %v623_v23 = vpop.f32.mrf.mxu1 }
  0xd3   : > { %v624_v34 = vadd.f32 %v623_v23, %v604_v22 }
  0xd4   : > { %v693_v26 = vmax.f32 %v622_v20, %v684_v21 }
  0xd6   : > { %v666_v29 = vpop.f32.mrf.mxu2  ;;  %v697_v32 = vmax.f32 %v565_v27, %v693_v26 }
  0xd8   : > { %v704_v40 = vadd.f32 %v1012_v33, %v697_v32 }
  0xd9   : > { %v685_v30 = vpop.f32.mrf.mxu3  ;;  %v607_v38 = vpop.f32.mrf.mxu0 }
  0xda   : > { %v686_v35 = vadd.f32 %v685_v30, %v666_v29  ;;  %v626_v39 = vpop.f32.mrf.mxu1  ;;  %v708_v45 = vmax.f32 %v704_v40, 0.0 }
  0xdb   : > { %v627_v47 = vadd.f32 %v626_v39, %v607_v38 }
  0xdc   : > { %v694_v37 = vmax.f32 %v624_v34, %v686_v35 }
  0xde   : > { %v698_v41 = vmax.f32 %v566_v36, %v694_v37  ;;  %v669_v43 = vpop.f32.mrf.mxu2 }
  0xe0   : > { %v705_v42 = vadd.f32 %v1012_v33, %v698_v41 }
  0xe1   : > { %v688_v44 = vpop.f32.mrf.mxu3  ;;  %v609_v53 = vpop.f32.mrf.mxu0 }
  0xe2   : > { %v709_v46 = vmax.f32 %v705_v42, 0.0  ;;  %v689_v48 = vadd.f32 %v688_v44, %v669_v43  ;;  %v628_v54 = vpop.f32.mrf.mxu1 }
  0xe3   : > { %v629_v61 = vadd.f32 %v628_v54, %v609_v53 }
  0xe4   : > { %v996_v51 = vpack.c.bf16 %v709_v46, %v708_v45  ;;  %v695_v52 = vmax.f32 %v627_v47, %v689_v48 }
  0xe6   : > { %997 = vst [vmem:[%s311_s29] sm:$0xff] %v996_v51   ;;  %v671_v57 = vpop.f32.mrf.mxu2  ;;  %v699_v60 = vmax.f32 %v567_v55, %v695_v52 }
  0xe8   : > { %v706_v1 = vadd.f32 %v1012_v33, %v699_v60 }
  0xe9   : > { %v690_v58 = vpop.f32.mrf.mxu3 }
  0xea   : > { %v691_v62 = vadd.f32 %v690_v58, %v671_v57  ;;  %v710_v4 = vmax.f32 %v706_v1, 0.0 }
  0xec   : > { %v696_v0 = vmax.f32 %v629_v61, %v691_v62 }
  0xee   : > { %v700_v2 = vmax.f32 %v568_v63, %v696_v0 }
  0xf0   : > { %v707_v3 = vadd.f32 %v1012_v33, %v700_v2 }
  0xf2   : > { %v711_v5 = vmax.f32 %v707_v3, 0.0 }
  0xf4   : > { %v1001_v6 = vpack.c.bf16 %v711_v5, %v710_v4 }
  0xf6   : > { %1003 = vst [vmem:[%s311_s29 + $0x8] sm:$0xff] %v1001_v6  }
  0xf7 PF: > { %s16_s21 = sadd.s32 1, %s1019_s21  }
  0xf8   : > { %p13_p4 = scmp.ge.s32.totalorder %s16_s21, 4  }
  0xfa   :  { %15 = sbr.rel (!%p13_p4) target bundleno = 1 (0x1), region = 83 }

// kernel: lenet_forward.5
= control target key start
LH: loop header
LB: loop body
LE: loop exit
PB: predicated region body
PF: predicated region fallthrough
CT: control target
= control target key end

     0   :  { %s5078_s1 = inlined_call_operand.vmem [shape: bf16[4096,128], index: 1, kind: input, shape index: {}]   ;;  %s5079_s0 = inlined_call_operand.vmem [shape: bf16[8,4096], index: 0, kind: input, shape index: {}]   ;;  %s5080_s2 = inlined_call_operand.vmem [shape: f32[1,128], index: 2, kind: input, shape index: {}]   ;;  %s5081_s4 = inlined_call_operand.vmem [shape: f32[1,128], index: 4, kind: input, shape index: {}]   ;;  %s5082_s3 = inlined_call_operand.vmem [shape: bf16[128,128], index: 3, kind: input, shape index: {}]   ;;  %s5083_s5 = inlined_call_operand.vmem [shape: bf16[128,128], index: 5, kind: input, shape index: {}]   ;;  %s5084_s6 = inlined_call_operand.vmem [shape: f32[1,128], index: 6, kind: input, shape index: {}]   ;;  %s5085_s7 = inlined_call_operand.vmem [shape: f32[8,128], index: 7, kind: output, shape index: {}]  }
   0x1   :  { %v3888_v0 = vld [vmem:[%s5078_s1 + $0x38] sm:$0xff]  ;;  %v3887_v4 = vld [vmem:[%s5078_s1 + $0x30] sm:$0xff]  ;;  %v3886_v8 = vld [vmem:[%s5078_s1 + $0x28] sm:$0xff] }
   0x2   :  { %v3896_v1 = vld [vmem:[%s5078_s1 + $0x78] sm:$0xff]  ;;  %2206 = vmatpush.bf16.msra.mxu0 %v3888_v0  ;;  %v3895_v5 = vld [vmem:[%s5078_s1 + $0x70] sm:$0xff]  ;;  %v3894_v9 = vld [vmem:[%s5078_s1 + $0x68] sm:$0xff] }
   0x3   :  { %v3904_v2 = vld [vmem:[%s5078_s1 + $0xb8] sm:$0xff]  ;;  %2219 = vmatpush.bf16.msra.mxu1 %v3896_v1  ;;  %v3903_v6 = vld [vmem:[%s5078_s1 + $0xb0] sm:$0xff]  ;;  %v3902_v10 = vld [vmem:[%s5078_s1 + $0xa8] sm:$0xff] }
   0x4   :  { %v3912_v3 = vld [vmem:[%s5078_s1 + $0xf8] sm:$0xff]  ;;  %2232 = vmatpush.bf16.msra.mxu2 %v3904_v2  ;;  %v3911_v7 = vld [vmem:[%s5078_s1 + $0xf0] sm:$0xff]  ;;  %v3910_v11 = vld [vmem:[%s5078_s1 + $0xe8] sm:$0xff] }
   0x5   :  { %2245 = vmatpush.bf16.msra.mxu3 %v3912_v3  ;;  %v3885_v12 = vld [vmem:[%s5078_s1 + $0x20] sm:$0xff]  ;;  %v3884_v16 = vld [vmem:[%s5078_s1 + $0x18] sm:$0xff]  ;;  %v3883_v20 = vld [vmem:[%s5078_s1 + $0x10] sm:$0xff] }
   0x6   :  { %2207 = vmatpush.bf16.msra.mxu0 %v3887_v4  ;;  %v3893_v13 = vld [vmem:[%s5078_s1 + $0x60] sm:$0xff]  ;;  %v3892_v17 = vld [vmem:[%s5078_s1 + $0x58] sm:$0xff]  ;;  %v3891_v21 = vld [vmem:[%s5078_s1 + $0x50] sm:$0xff] }
   0x7   :  { %2220 = vmatpush.bf16.msra.mxu1 %v3895_v5  ;;  %v3901_v14 = vld [vmem:[%s5078_s1 + $0xa0] sm:$0xff]  ;;  %v3900_v18 = vld [vmem:[%s5078_s1 + $0x98] sm:$0xff]  ;;  %v3899_v22 = vld [vmem:[%s5078_s1 + $0x90] sm:$0xff] }
   0x8   :  { %2233 = vmatpush.bf16.msra.mxu2 %v3903_v6  ;;  %v3909_v15 = vld [vmem:[%s5078_s1 + $0xe0] sm:$0xff]  ;;  %v3908_v19 = vld [vmem:[%s5078_s1 + $0xd8] sm:$0xff]  ;;  %v3907_v23 = vld [vmem:[%s5078_s1 + $0xd0] sm:$0xff] }
   0x9   :  { %2246 = vmatpush.bf16.msra.mxu3 %v3911_v7  ;;  %v3882_v24 = vld [vmem:[%s5078_s1 + $0x8] sm:$0xff]  ;;  %v26_v29 = vld [vmem:[%s5079_s0] sm:$0xff]  ;;  %v3920_v38 = vld [vmem:[%s5078_s1 + $0x138] sm:$0xff] }
   0xa   :  { %2208 = vmatpush.bf16.msra.mxu0 %v3886_v8  ;;  %v3890_v25 = vld [vmem:[%s5078_s1 + $0x48] sm:$0xff]  ;;  %v3881_v30 = vld [vmem:[%s5078_s1] sm:$0xff]  ;;  %v574_v33 = vunpack.c.l.b16 %v26_v29  ;;  %v575_v37 = vunpack.c.h.b16 %v26_v29  ;;  %v3928_v39 = vld [vmem:[%s5078_s1 + $0x178] sm:$0xff] }
   0xb   :  { %2221 = vmatpush.bf16.msra.mxu1 %v3894_v9  ;;  %v3898_v26 = vld [vmem:[%s5078_s1 + $0x88] sm:$0xff]  ;;  %v3889_v31 = vld [vmem:[%s5078_s1 + $0x40] sm:$0xff]  ;;  %v3936_v40 = vld [vmem:[%s5078_s1 + $0x1b8] sm:$0xff] }
   0xc   :  { %2234 = vmatpush.bf16.msra.mxu2 %v3902_v10  ;;  %v3906_v27 = vld [vmem:[%s5078_s1 + $0xc8] sm:$0xff]  ;;  %v3897_v34 = vld [vmem:[%s5078_s1 + $0x80] sm:$0xff]  ;;  %v3944_v41 = vld [vmem:[%s5078_s1 + $0x1f8] sm:$0xff]  ;;  %v606_v43 = vpack.c.b16 %v574_v33, %v574_v33  ;;  %v607_v45 = vpack.c.b16 %v575_v37, %v575_v37 }
   0xd   :  { %2247 = vmatpush.bf16.msra.mxu3 %v3910_v11  ;;  %v27_v28 = vld [vmem:[%s5079_s0 + $0x8] sm:$0xff]  ;;  %v3905_v35 = vld [vmem:[%s5078_s1 + $0xc0] sm:$0xff]  ;;  %v3919_v46 = vld [vmem:[%s5078_s1 + $0x130] sm:$0xff] }
   0xe   :  { %2209 = vmatpush.bf16.msra.mxu0 %v3885_v12  ;;  %v576_v32 = vunpack.c.l.b16 %v27_v28  ;;  %v577_v36 = vunpack.c.h.b16 %v27_v28  ;;  %v3927_v47 = vld [vmem:[%s5078_s1 + $0x170] sm:$0xff]  ;;  %v3918_v50 = vld [vmem:[%s5078_s1 + $0x128] sm:$0xff]  ;;  %v3917_v54 = vld [vmem:[%s5078_s1 + $0x120] sm:$0xff] }
   0xf   :  { %2222 = vmatpush.bf16.msra.mxu1 %v3893_v13  ;;  %v3935_v48 = vld [vmem:[%s5078_s1 + $0x1b0] sm:$0xff]  ;;  %v3926_v51 = vld [vmem:[%s5078_s1 + $0x168] sm:$0xff]  ;;  %v3925_v55 = vld [vmem:[%s5078_s1 + $0x160] sm:$0xff] }
  0x10   :  { %2235 = vmatpush.bf16.msra.mxu2 %v3901_v14  ;;  %v608_v42 = vpack.c.b16 %v576_v32, %v576_v32  ;;  %v609_v44 = vpack.c.b16 %v577_v36, %v577_v36  ;;  %v3943_v49 = vld [vmem:[%s5078_s1 + $0x1f0] sm:$0xff]  ;;  %v3934_v52 = vld [vmem:[%s5078_s1 + $0x1a8] sm:$0xff]  ;;  %v3933_v56 = vld [vmem:[%s5078_s1 + $0x1a0] sm:$0xff] }
  0x11   :  { %2248 = vmatpush.bf16.msra.mxu3 %v3909_v15  ;;  %v3942_v53 = vld [vmem:[%s5078_s1 + $0x1e8] sm:$0xff]  ;;  %v3941_v57 = vld [vmem:[%s5078_s1 + $0x1e0] sm:$0xff]  ;;  %v3916_v58 = vld [vmem:[%s5078_s1 + $0x118] sm:$0xff] }
  0x12   :  { %2210 = vmatpush.bf16.msra.mxu0 %v3884_v16  ;;  %v3924_v59 = vld [vmem:[%s5078_s1 + $0x158] sm:$0xff]  ;;  %v3915_v62 = vld [vmem:[%s5078_s1 + $0x110] sm:$0xff]  ;;  %v3914_v2 = vld [vmem:[%s5078_s1 + $0x108] sm:$0xff] }
  0x13   :  { %2223 = vmatpush.bf16.msra.mxu1 %v3892_v17  ;;  %v3932_v60 = vld [vmem:[%s5078_s1 + $0x198] sm:$0xff]  ;;  %v3923_v63 = vld [vmem:[%s5078_s1 + $0x150] sm:$0xff]  ;;  %v3922_v3 = vld [vmem:[%s5078_s1 + $0x148] sm:$0xff] }
  0x14   :  { %2236 = vmatpush.bf16.msra.mxu2 %v3900_v18  ;;  %v3940_v61 = vld [vmem:[%s5078_s1 + $0x1d8] sm:$0xff]  ;;  %v3931_v0 = vld [vmem:[%s5078_s1 + $0x190] sm:$0xff]  ;;  %v3930_v4 = vld [vmem:[%s5078_s1 + $0x188] sm:$0xff] }
  0x15   :  { %2249 = vmatpush.bf16.msra.mxu3 %v3908_v19  ;;  %v3939_v1 = vld [vmem:[%s5078_s1 + $0x1d0] sm:$0xff]  ;;  %v3938_v5 = vld [vmem:[%s5078_s1 + $0x1c8] sm:$0xff]  ;;  %v29_v6 = vld [vmem:[%s5079_s0 + $0x18] sm:$0xff] }
  0x16   :  { %2211 = vmatpush.bf16.msra.mxu0 %v3883_v20  ;;  %v28_v7 = vld [vmem:[%s5079_s0 + $0x10] sm:$0xff]  ;;  %v3913_v8 = vld [vmem:[%s5078_s1 + $0x100] sm:$0xff]  ;;  %v580_v10 = vunpack.c.l.b16 %v29_v6  ;;  %v581_v14 = vunpack.c.h.b16 %v29_v6  ;;  %v3952_v16 = vld [vmem:[%s5078_s1 + $0x238] sm:$0xff] }
  0x17   :  { %2224 = vmatpush.bf16.msra.mxu1 %v3891_v21  ;;  %v3921_v9 = vld [vmem:[%s5078_s1 + $0x140] sm:$0xff]  ;;  %v578_v11 = vunpack.c.l.b16 %v28_v7  ;;  %v579_v15 = vunpack.c.h.b16 %v28_v7  ;;  %v3960_v17 = vld [vmem:[%s5078_s1 + $0x278] sm:$0xff]  ;;  %v3950_v28 = vld [vmem:[%s5078_s1 + $0x228] sm:$0xff] }
  0x18   :  { %2237 = vmatpush.bf16.msra.mxu2 %v3899_v22  ;;  %v3929_v12 = vld [vmem:[%s5078_s1 + $0x180] sm:$0xff]  ;;  %v3968_v18 = vld [vmem:[%s5078_s1 + $0x2b8] sm:$0xff]  ;;  %v612_v20 = vpack.c.b16 %v580_v10, %v580_v10  ;;  %v613_v22 = vpack.c.b16 %v581_v14, %v581_v14  ;;  %v3958_v29 = vld [vmem:[%s5078_s1 + $0x268] sm:$0xff] }
  0x19   :  { %2250 = vmatpush.bf16.msra.mxu3 %v3907_v23  ;;  %v3937_v13 = vld [vmem:[%s5078_s1 + $0x1c0] sm:$0xff]  ;;  %v3976_v19 = vld [vmem:[%s5078_s1 + $0x2f8] sm:$0xff]  ;;  %v610_v21 = vpack.c.b16 %v578_v11, %v578_v11  ;;  %v611_v23 = vpack.c.b16 %v579_v15, %v579_v15  ;;  %v3982_v6 = vld [vmem:[%s5078_s1 + $0x328] sm:$0xff] }
  0x1a   :  { %2212 = vmatpush.bf16.msra.mxu0 %v3882_v24  ;;  %v3951_v24 = vld [vmem:[%s5078_s1 + $0x230] sm:$0xff]  ;;  %v3949_v32 = vld [vmem:[%s5078_s1 + $0x220] sm:$0xff]  ;;  %v3948_v36 = vld [vmem:[%s5078_s1 + $0x218] sm:$0xff] }
  0x1b   :  { %2225 = vmatpush.bf16.msra.mxu1 %v3890_v25  ;;  %v3959_v25 = vld [vmem:[%s5078_s1 + $0x270] sm:$0xff]  ;;  %v3957_v33 = vld [vmem:[%s5078_s1 + $0x260] sm:$0xff]  ;;  %v3956_v37 = vld [vmem:[%s5078_s1 + $0x258] sm:$0xff] }
  0x1c   :  { %2238 = vmatpush.bf16.msra.mxu2 %v3898_v26  ;;  %v3967_v26 = vld [vmem:[%s5078_s1 + $0x2b0] sm:$0xff]  ;;  %v3990_v7 = vld [vmem:[%s5078_s1 + $0x368] sm:$0xff]  ;;  %v3981_v10 = vld [vmem:[%s5078_s1 + $0x320] sm:$0xff] }
  0x1d   :  { %2251 = vmatpush.bf16.msra.mxu3 %v3906_v27  ;;  %v3975_v27 = vld [vmem:[%s5078_s1 + $0x2f0] sm:$0xff]  ;;  %v3989_v11 = vld [vmem:[%s5078_s1 + $0x360] sm:$0xff]  ;;  %v3980_v14 = vld [vmem:[%s5078_s1 + $0x318] sm:$0xff] }
  0x1e   :  { %2213 = vmatpush.bf16.msra.mxu0 %v3881_v30  ;;  %v3966_v30 = vld [vmem:[%s5078_s1 + $0x2a8] sm:$0xff]  ;;  %v3988_v15 = vld [vmem:[%s5078_s1 + $0x358] sm:$0xff] }
  0x1f   :  { %2226 = vmatpush.bf16.msra.mxu1 %v3889_v31  ;;  %v3974_v31 = vld [vmem:[%s5078_s1 + $0x2e8] sm:$0xff] }
  0x20   :  { %2239 = vmatpush.bf16.msra.mxu2 %v3897_v34  ;;  %v3965_v34 = vld [vmem:[%s5078_s1 + $0x2a0] sm:$0xff] }
  0x21   :  { %2252 = vmatpush.bf16.msra.mxu3 %v3905_v35  ;;  %2214 = vmatmul.bf16.vlgmr.msra.gmra.mxu0 %v606_v43  ;;  %v3973_v35 = vld [vmem:[%s5078_s1 + $0x2e0] sm:$0xff]  ;;  %v3971_v43 = vld [vmem:[%s5078_s1 + $0x2d0] sm:$0xff] }
  0x22   :  { %2258 = vmatpush.bf16.msrb.mxu0 %v3920_v38  ;;  %2227 = vmatmul.bf16.vlgmr.msra.gmra.mxu1 %v607_v45  ;;  %v3964_v38 = vld [vmem:[%s5078_s1 + $0x298] sm:$0xff]  ;;  %v3954_v45 = vld [vmem:[%s5078_s1 + $0x248] sm:$0xff] }
  0x23   :  { %2271 = vmatpush.bf16.msrb.mxu1 %v3928_v39  ;;  %2240 = vmatmul.bf16.vlgmr.msra.gmra.mxu2 %v608_v42  ;;  %v3972_v39 = vld [vmem:[%s5078_s1 + $0x2d8] sm:$0xff]  ;;  %v3963_v42 = vld [vmem:[%s5078_s1 + $0x290] sm:$0xff] }
  0x24   :  { %2284 = vmatpush.bf16.msrb.mxu2 %v3936_v40  ;;  %2253 = vmatmul.bf16.vlgmr.msra.gmra.mxu3 %v609_v44  ;;  %v3947_v40 = vld [vmem:[%s5078_s1 + $0x210] sm:$0xff]  ;;  %v3946_v44 = vld [vmem:[%s5078_s1 + $0x208] sm:$0xff] }
  0x25   :  { %2297 = vmatpush.bf16.msrb.mxu3 %v3944_v41  ;;  %v3955_v41 = vld [vmem:[%s5078_s1 + $0x250] sm:$0xff] }
  0x26   :  { %2259 = vmatpush.bf16.msrb.mxu0 %v3919_v46  ;;  %v3962_v46 = vld [vmem:[%s5078_s1 + $0x288] sm:$0xff] }
  0x27   :  { %2272 = vmatpush.bf16.msrb.mxu1 %v3927_v47  ;;  %v3970_v47 = vld [vmem:[%s5078_s1 + $0x2c8] sm:$0xff] }
  0x28   :  { %2285 = vmatpush.bf16.msrb.mxu2 %v3935_v48  ;;  %v30_v48 = vld [vmem:[%s5079_s0 + $0x20] sm:$0xff] }
  0x29   :  { %2298 = vmatpush.bf16.msrb.mxu3 %v3943_v49  ;;  %v31_v49 = vld [vmem:[%s5079_s0 + $0x28] sm:$0xff] }
  0x2a   :  { %2260 = vmatpush.bf16.msrb.mxu0 %v3918_v50  ;;  %v3945_v50 = vld [vmem:[%s5078_s1 + $0x200] sm:$0xff] }
  0x2b   :  { %2273 = vmatpush.bf16.msrb.mxu1 %v3926_v51  ;;  %v3953_v51 = vld [vmem:[%s5078_s1 + $0x240] sm:$0xff] }
  0x2c   :  { %2286 = vmatpush.bf16.msrb.mxu2 %v3934_v52  ;;  %v582_v52 = vunpack.c.l.b16 %v30_v48 }
  0x2d   :  { %2299 = vmatpush.bf16.msrb.mxu3 %v3942_v53  ;;  %v584_v53 = vunpack.c.l.b16 %v31_v49 }
  0x2e   :  { %2261 = vmatpush.bf16.msrb.mxu0 %v3917_v54  ;;  %v3961_v54 = vld [vmem:[%s5078_s1 + $0x280] sm:$0xff] }
  0x2f   :  { %2274 = vmatpush.bf16.msrb.mxu1 %v3925_v55  ;;  %v3969_v55 = vld [vmem:[%s5078_s1 + $0x2c0] sm:$0xff] }
  0x30   :  { %2287 = vmatpush.bf16.msrb.mxu2 %v3933_v56  ;;  %v583_v56 = vunpack.c.h.b16 %v30_v48  ;;  %v4014_v48 = vld [vmem:[%s5078_s1 + $0x428] sm:$0xff] }
  0x31   :  { %2300 = vmatpush.bf16.msrb.mxu3 %v3941_v57  ;;  %v585_v57 = vunpack.c.h.b16 %v31_v49  ;;  %v4022_v49 = vld [vmem:[%s5078_s1 + $0x468] sm:$0xff] }
  0x32   :  { %2262 = vmatpush.bf16.msrb.mxu0 %v3916_v58  ;;  %v3984_v58 = vld [vmem:[%s5078_s1 + $0x338] sm:$0xff] }
  0x33   :  { %2275 = vmatpush.bf16.msrb.mxu1 %v3924_v59  ;;  %v3992_v59 = vld [vmem:[%s5078_s1 + $0x378] sm:$0xff] }
  0x34   :  { %2288 = vmatpush.bf16.msrb.mxu2 %v3932_v60  ;;  %v4000_v60 = vld [vmem:[%s5078_s1 + $0x3b8] sm:$0xff] }
  0x35   :  { %2301 = vmatpush.bf16.msrb.mxu3 %v3940_v61  ;;  %v4008_v61 = vld [vmem:[%s5078_s1 + $0x3f8] sm:$0xff] }
  0x36   :  { %2263 = vmatpush.bf16.msrb.mxu0 %v3915_v62  ;;  %v614_v62 = vpack.c.b16 %v582_v52, %v582_v52  ;;  %v4013_v52 = vld [vmem:[%s5078_s1 + $0x420] sm:$0xff] }
  0x37   :  { %2276 = vmatpush.bf16.msrb.mxu1 %v3923_v63  ;;  %v616_v63 = vpack.c.b16 %v584_v53, %v584_v53  ;;  %v4021_v53 = vld [vmem:[%s5078_s1 + $0x460] sm:$0xff] }
  0x38   :  { %2289 = vmatpush.bf16.msrb.mxu2 %v3931_v0  ;;  %v615_v0 = vpack.c.b16 %v583_v56, %v583_v56  ;;  %v4012_v56 = vld [vmem:[%s5078_s1 + $0x418] sm:$0xff] }
  0x39   :  { %2302 = vmatpush.bf16.msrb.mxu3 %v3939_v1  ;;  %v617_v1 = vpack.c.b16 %v585_v57, %v585_v57  ;;  %v4020_v57 = vld [vmem:[%s5078_s1 + $0x458] sm:$0xff] }
  0x3a   :  { %2264 = vmatpush.bf16.msrb.mxu0 %v3914_v2  ;;  %v3983_v2 = vld [vmem:[%s5078_s1 + $0x330] sm:$0xff] }
  0x3b   :  { %2277 = vmatpush.bf16.msrb.mxu1 %v3922_v3  ;;  %v3991_v3 = vld [vmem:[%s5078_s1 + $0x370] sm:$0xff] }
  0x3c   :  { %2290 = vmatpush.bf16.msrb.mxu2 %v3930_v4  ;;  %v3999_v4 = vld [vmem:[%s5078_s1 + $0x3b0] sm:$0xff] }
  0x3d   :  { %2303 = vmatpush.bf16.msrb.mxu3 %v3938_v5  ;;  %v4007_v5 = vld [vmem:[%s5078_s1 + $0x3f0] sm:$0xff] }
  0x3e   :  { %2265 = vmatpush.bf16.msrb.mxu0 %v3913_v8  ;;  %v3998_v8 = vld [vmem:[%s5078_s1 + $0x3a8] sm:$0xff] }
  0x3f   :  { %2278 = vmatpush.bf16.msrb.mxu1 %v3921_v9  ;;  %v4006_v9 = vld [vmem:[%s5078_s1 + $0x3e8] sm:$0xff] }
  0x40   :  { %2291 = vmatpush.bf16.msrb.mxu2 %v3929_v12  ;;  %v3997_v12 = vld [vmem:[%s5078_s1 + $0x3a0] sm:$0xff] }
  0x41   :  { %2304 = vmatpush.bf16.msrb.mxu3 %v3937_v13  ;;  %2266 = vmatmul.bf16.vlgmr.msrb.gmra.mxu0 %v610_v21  ;;  %v4005_v13 = vld [vmem:[%s5078_s1 + $0x3e0] sm:$0xff]  ;;  %v4003_v21 = vld [vmem:[%s5078_s1 + $0x3d0] sm:$0xff] }
  0x42   :  { %2310 = vmatpush.bf16.msra.mxu0 %v3952_v16  ;;  %2279 = vmatmul.bf16.vlgmr.msrb.gmra.mxu1 %v611_v23  ;;  %v3996_v16 = vld [vmem:[%s5078_s1 + $0x398] sm:$0xff]  ;;  %v3986_v23 = vld [vmem:[%s5078_s1 + $0x348] sm:$0xff] }
  0x43   :  { %2323 = vmatpush.bf16.msra.mxu1 %v3960_v17  ;;  %2292 = vmatmul.bf16.vlgmr.msrb.gmra.mxu2 %v612_v20  ;;  %v4004_v17 = vld [vmem:[%s5078_s1 + $0x3d8] sm:$0xff]  ;;  %v3995_v20 = vld [vmem:[%s5078_s1 + $0x390] sm:$0xff] }
  0x44   :  { %2336 = vmatpush.bf16.msra.mxu2 %v3968_v18  ;;  %2305 = vmatmul.bf16.vlgmr.msrb.gmra.mxu3 %v613_v22  ;;  %v3979_v18 = vld [vmem:[%s5078_s1 + $0x310] sm:$0xff]  ;;  %v3978_v22 = vld [vmem:[%s5078_s1 + $0x308] sm:$0xff] }
  0x45   :  { %2349 = vmatpush.bf16.msra.mxu3 %v3976_v19  ;;  %v3987_v19 = vld [vmem:[%s5078_s1 + $0x350] sm:$0xff] }
  0x46   :  { %2311 = vmatpush.bf16.msra.mxu0 %v3951_v24  ;;  %v3994_v24 = vld [vmem:[%s5078_s1 + $0x388] sm:$0xff] }
  0x47   :  { %2324 = vmatpush.bf16.msra.mxu1 %v3959_v25  ;;  %v4002_v25 = vld [vmem:[%s5078_s1 + $0x3c8] sm:$0xff] }
  0x48   :  { %2337 = vmatpush.bf16.msra.mxu2 %v3967_v26  ;;  %v32_v26 = vld [vmem:[%s5079_s0 + $0x30] sm:$0xff] }
  0x49   :  { %2350 = vmatpush.bf16.msra.mxu3 %v3975_v27  ;;  %v33_v27 = vld [vmem:[%s5079_s0 + $0x38] sm:$0xff] }
  0x4a   :  { %2312 = vmatpush.bf16.msra.mxu0 %v3950_v28  ;;  %v3977_v28 = vld [vmem:[%s5078_s1 + $0x300] sm:$0xff] }
  0x4b   :  { %2325 = vmatpush.bf16.msra.mxu1 %v3958_v29  ;;  %v3985_v29 = vld [vmem:[%s5078_s1 + $0x340] sm:$0xff] }
  0x4c   :  { %2338 = vmatpush.bf16.msra.mxu2 %v3966_v30  ;;  %v586_v30 = vunpack.c.l.b16 %v32_v26 }
  0x4d   :  { %2351 = vmatpush.bf16.msra.mxu3 %v3974_v31  ;;  %v588_v31 = vunpack.c.l.b16 %v33_v27 }
  0x4e   :  { %2313 = vmatpush.bf16.msra.mxu0 %v3949_v32  ;;  %v3993_v32 = vld [vmem:[%s5078_s1 + $0x380] sm:$0xff] }
  0x4f   :  { %2326 = vmatpush.bf16.msra.mxu1 %v3957_v33  ;;  %v4001_v33 = vld [vmem:[%s5078_s1 + $0x3c0] sm:$0xff] }
  0x50   :  { %2339 = vmatpush.bf16.msra.mxu2 %v3965_v34  ;;  %v587_v34 = vunpack.c.h.b16 %v32_v26  ;;  %v4046_v26 = vld [vmem:[%s5078_s1 + $0x528] sm:$0xff] }
  0x51   :  { %2352 = vmatpush.bf16.msra.mxu3 %v3973_v35  ;;  %v589_v35 = vunpack.c.h.b16 %v33_v27  ;;  %v4054_v27 = vld [vmem:[%s5078_s1 + $0x568] sm:$0xff] }
  0x52   :  { %2314 = vmatpush.bf16.msra.mxu0 %v3948_v36  ;;  %v4016_v36 = vld [vmem:[%s5078_s1 + $0x438] sm:$0xff] }
  0x53   :  { %2327 = vmatpush.bf16.msra.mxu1 %v3956_v37  ;;  %v4024_v37 = vld [vmem:[%s5078_s1 + $0x478] sm:$0xff] }
  0x54   :  { %2340 = vmatpush.bf16.msra.mxu2 %v3964_v38  ;;  %v4032_v38 = vld [vmem:[%s5078_s1 + $0x4b8] sm:$0xff] }
  0x55   :  { %2353 = vmatpush.bf16.msra.mxu3 %v3972_v39  ;;  %v4040_v39 = vld [vmem:[%s5078_s1 + $0x4f8] sm:$0xff] }
  0x56   :  { %2315 = vmatpush.bf16.msra.mxu0 %v3947_v40  ;;  %v618_v40 = vpack.c.b16 %v586_v30, %v586_v30  ;;  %v4070_v30 = vld [vmem:[%s5078_s1 + $0x5e8] sm:$0xff] }
  0x57   :  { %2328 = vmatpush.bf16.msra.mxu1 %v3955_v41  ;;  %v620_v41 = vpack.c.b16 %v588_v31, %v588_v31 }
  0x58   :  { %2341 = vmatpush.bf16.msra.mxu2 %v3963_v42  ;;  %v619_v42 = vpack.c.b16 %v587_v34, %v587_v34 }
  0x59   :  { %2354 = vmatpush.bf16.msra.mxu3 %v3971_v43  ;;  %v621_v43 = vpack.c.b16 %v589_v35, %v589_v35 }
  0x5a   :  { %2316 = vmatpush.bf16.msra.mxu0 %v3946_v44  ;;  %v4015_v44 = vld [vmem:[%s5078_s1 + $0x430] sm:$0xff] }
  0x5b   :  { %2329 = vmatpush.bf16.msra.mxu1 %v3954_v45  ;;  %v4023_v45 = vld [vmem:[%s5078_s1 + $0x470] sm:$0xff] }
  0x5c   :  { %2342 = vmatpush.bf16.msra.mxu2 %v3962_v46  ;;  %v4031_v46 = vld [vmem:[%s5078_s1 + $0x4b0] sm:$0xff] }
  0x5d   :  { %2355 = vmatpush.bf16.msra.mxu3 %v3970_v47  ;;  %v4039_v47 = vld [vmem:[%s5078_s1 + $0x4f0] sm:$0xff] }
  0x5e   :  { %2317 = vmatpush.bf16.msra.mxu0 %v3945_v50  ;;  %v4030_v50 = vld [vmem:[%s5078_s1 + $0x4a8] sm:$0xff] }
  0x5f   :  { %2330 = vmatpush.bf16.msra.mxu1 %v3953_v51  ;;  %v4038_v51 = vld [vmem:[%s5078_s1 + $0x4e8] sm:$0xff] }
  0x60   :  { %2343 = vmatpush.bf16.msra.mxu2 %v3961_v54  ;;  %v4029_v54 = vld [vmem:[%s5078_s1 + $0x4a0] sm:$0xff] }
  0x61   :  { %2356 = vmatpush.bf16.msra.mxu3 %v3969_v55  ;;  %2318 = vmatmul.bf16.vlgmr.msra.gmra.mxu0 %v614_v62  ;;  %v4037_v55 = vld [vmem:[%s5078_s1 + $0x4e0] sm:$0xff]  ;;  %v4027_v62 = vld [vmem:[%s5078_s1 + $0x490] sm:$0xff] }
  0x62   :  { %2362 = vmatpush.bf16.msrb.mxu0 %v3984_v58  ;;  %2331 = vmatmul.bf16.vlgmr.msra.gmra.mxu1 %v615_v0  ;;  %v4028_v58 = vld [vmem:[%s5078_s1 + $0x498] sm:$0xff]  ;;  %v4010_v0 = vld [vmem:[%s5078_s1 + $0x408] sm:$0xff] }
  0x63   :  { %2375 = vmatpush.bf16.msrb.mxu1 %v3992_v59  ;;  %2344 = vmatmul.bf16.vlgmr.msra.gmra.mxu2 %v616_v63  ;;  %v4036_v59 = vld [vmem:[%s5078_s1 + $0x4d8] sm:$0xff]  ;;  %v4035_v63 = vld [vmem:[%s5078_s1 + $0x4d0] sm:$0xff] }
  0x64   :  { %2388 = vmatpush.bf16.msrb.mxu2 %v4000_v60  ;;  %2357 = vmatmul.bf16.vlgmr.msra.gmra.mxu3 %v617_v1  ;;  %v4011_v60 = vld [vmem:[%s5078_s1 + $0x410] sm:$0xff]  ;;  %v4018_v1 = vld [vmem:[%s5078_s1 + $0x448] sm:$0xff] }
  0x65   :  { %2401 = vmatpush.bf16.msrb.mxu3 %v4008_v61  ;;  %v4019_v61 = vld [vmem:[%s5078_s1 + $0x450] sm:$0xff] }
  0x66   :  { %2363 = vmatpush.bf16.msrb.mxu0 %v3983_v2  ;;  %v4026_v2 = vld [vmem:[%s5078_s1 + $0x488] sm:$0xff] }
  0x67   :  { %2376 = vmatpush.bf16.msrb.mxu1 %v3991_v3  ;;  %v4034_v3 = vld [vmem:[%s5078_s1 + $0x4c8] sm:$0xff] }
  0x68   :  { %2389 = vmatpush.bf16.msrb.mxu2 %v3999_v4  ;;  %v34_v4 = vld [vmem:[%s5079_s0 + $0x40] sm:$0xff] }
  0x69   :  { %2402 = vmatpush.bf16.msrb.mxu3 %v4007_v5  ;;  %v35_v5 = vld [vmem:[%s5079_s0 + $0x48] sm:$0xff] }
  0x6a   :  { %2364 = vmatpush.bf16.msrb.mxu0 %v3982_v6  ;;  %v4009_v6 = vld [vmem:[%s5078_s1 + $0x400] sm:$0xff] }
  0x6b   :  { %2377 = vmatpush.bf16.msrb.mxu1 %v3990_v7  ;;  %v4017_v7 = vld [vmem:[%s5078_s1 + $0x440] sm:$0xff] }
  0x6c   :  { %2390 = vmatpush.bf16.msrb.mxu2 %v3998_v8  ;;  %v590_v8 = vunpack.c.l.b16 %v34_v4 }
  0x6d   :  { %2403 = vmatpush.bf16.msrb.mxu3 %v4006_v9  ;;  %v592_v9 = vunpack.c.l.b16 %v35_v5 }
  0x6e   :  { %2365 = vmatpush.bf16.msrb.mxu0 %v3981_v10  ;;  %v4025_v10 = vld [vmem:[%s5078_s1 + $0x480] sm:$0xff] }
  0x6f   :  { %2378 = vmatpush.bf16.msrb.mxu1 %v3989_v11  ;;  %v4033_v11 = vld [vmem:[%s5078_s1 + $0x4c0] sm:$0xff] }
  0x70   :  { %2391 = vmatpush.bf16.msrb.mxu2 %v3997_v12  ;;  %v591_v12 = vunpack.c.h.b16 %v34_v4 }
  0x71   :  { %2404 = vmatpush.bf16.msrb.mxu3 %v4005_v13  ;;  %v593_v13 = vunpack.c.h.b16 %v35_v5  ;;  %v4080_v5 = vld [vmem:[%s5078_s1 + $0x638] sm:$0xff] }
  0x72   :  { %2366 = vmatpush.bf16.msrb.mxu0 %v3980_v14  ;;  %v4048_v14 = vld [vmem:[%s5078_s1 + $0x538] sm:$0xff] }
  0x73   :  { %2379 = vmatpush.bf16.msrb.mxu1 %v3988_v15  ;;  %v4056_v15 = vld [vmem:[%s5078_s1 + $0x578] sm:$0xff] }
  0x74   :  { %2392 = vmatpush.bf16.msrb.mxu2 %v3996_v16  ;;  %v4064_v16 = vld [vmem:[%s5078_s1 + $0x5b8] sm:$0xff] }
  0x75   :  { %2405 = vmatpush.bf16.msrb.mxu3 %v4004_v17  ;;  %v4072_v17 = vld [vmem:[%s5078_s1 + $0x5f8] sm:$0xff] }
  0x76   :  { %2367 = vmatpush.bf16.msrb.mxu0 %v3979_v18  ;;  %v622_v18 = vpack.c.b16 %v590_v8, %v590_v8  ;;  %v4104_v8 = vld [vmem:[%s5078_s1 + $0x6f8] sm:$0xff] }
  0x77   :  { %2380 = vmatpush.bf16.msrb.mxu1 %v3987_v19  ;;  %v624_v19 = vpack.c.b16 %v592_v9, %v592_v9 }
  0x78   :  { %2393 = vmatpush.bf16.msrb.mxu2 %v3995_v20  ;;  %v623_v20 = vpack.c.b16 %v591_v12, %v591_v12 }
  0x79   :  { %2406 = vmatpush.bf16.msrb.mxu3 %v4003_v21  ;;  %v625_v21 = vpack.c.b16 %v593_v13, %v593_v13  ;;  %v4079_v13 = vld [vmem:[%s5078_s1 + $0x630] sm:$0xff] }
  0x7a   :  { %2368 = vmatpush.bf16.msrb.mxu0 %v3978_v22  ;;  %v4047_v22 = vld [vmem:[%s5078_s1 + $0x530] sm:$0xff] }
  0x7b   :  { %2381 = vmatpush.bf16.msrb.mxu1 %v3986_v23  ;;  %v4055_v23 = vld [vmem:[%s5078_s1 + $0x570] sm:$0xff] }
  0x7c   :  { %2394 = vmatpush.bf16.msrb.mxu2 %v3994_v24  ;;  %v4063_v24 = vld [vmem:[%s5078_s1 + $0x5b0] sm:$0xff] }
  0x7d   :  { %2407 = vmatpush.bf16.msrb.mxu3 %v4002_v25  ;;  %v4071_v25 = vld [vmem:[%s5078_s1 + $0x5f0] sm:$0xff] }
  0x7e   :  { %2369 = vmatpush.bf16.msrb.mxu0 %v3977_v28  ;;  %v4153_v28 = vld [vmem:[%s5080_s2] ss:$0 sm:$0xff] }
  0x7f   :  { %2382 = vmatpush.bf16.msrb.mxu1 %v3985_v29  ;;  %v4062_v29 = vld [vmem:[%s5078_s1 + $0x5a8] sm:$0xff] }
  0x80   :  { %2395 = vmatpush.bf16.msrb.mxu2 %v3993_v32  ;;  %v4045_v32 = vld [vmem:[%s5078_s1 + $0x520] sm:$0xff] }
  0x81   :  { %2408 = vmatpush.bf16.msrb.mxu3 %v4001_v33  ;;  %2370 = vmatmul.bf16.vlgmr.msrb.gmra.mxu0 %v618_v40  ;;  %v4053_v33 = vld [vmem:[%s5078_s1 + $0x560] sm:$0xff]  ;;  %v4052_v40 = vld [vmem:[%s5078_s1 + $0x558] sm:$0xff] }
  0x82   :  { %2414 = vmatpush.bf16.msra.mxu0 %v4016_v36  ;;  %2383 = vmatmul.bf16.vlgmr.msrb.gmra.mxu1 %v619_v42  ;;  %v4061_v36 = vld [vmem:[%s5078_s1 + $0x5a0] sm:$0xff]  ;;  %v4068_v42 = vld [vmem:[%s5078_s1 + $0x5d8] sm:$0xff] }
  0x83   :  { %2427 = vmatpush.bf16.msra.mxu1 %v4024_v37  ;;  %2396 = vmatmul.bf16.vlgmr.msrb.gmra.mxu2 %v620_v41  ;;  %v4069_v37 = vld [vmem:[%s5078_s1 + $0x5e0] sm:$0xff]  ;;  %v4060_v41 = vld [vmem:[%s5078_s1 + $0x598] sm:$0xff] }
  0x84   :  { %2440 = vmatpush.bf16.msra.mxu2 %v4032_v38  ;;  %2409 = vmatmul.bf16.vlgmr.msrb.gmra.mxu3 %v621_v43 }
  0x85   :  { %2453 = vmatpush.bf16.msra.mxu3 %v4040_v39  ;;  %v4044_v39 = vld [vmem:[%s5078_s1 + $0x518] sm:$0xff] }
  0x86   :  { %2415 = vmatpush.bf16.msra.mxu0 %v4015_v44 }
  0x87   :  { %2428 = vmatpush.bf16.msra.mxu1 %v4023_v45 }
  0x88   :  { %2441 = vmatpush.bf16.msra.mxu2 %v4031_v46 }
  0x89   :  { %2454 = vmatpush.bf16.msra.mxu3 %v4039_v47  ;;  %v4043_v47 = vld [vmem:[%s5078_s1 + $0x510] sm:$0xff] }
  0x8a   :  { %2416 = vmatpush.bf16.msra.mxu0 %v4014_v48  ;;  %v4051_v48 = vld [vmem:[%s5078_s1 + $0x550] sm:$0xff] }
  0x8b   :  { %2429 = vmatpush.bf16.msra.mxu1 %v4022_v49 }
  0x8c   :  { %2442 = vmatpush.bf16.msra.mxu2 %v4030_v50 }
  0x8d   :  { %2455 = vmatpush.bf16.msra.mxu3 %v4038_v51  ;;  %v4059_v51 = vld [vmem:[%s5078_s1 + $0x590] sm:$0xff] }
  0x8e   :  { %2417 = vmatpush.bf16.msra.mxu0 %v4013_v52  ;;  %v4067_v52 = vld [vmem:[%s5078_s1 + $0x5d0] sm:$0xff] }
  0x8f   :  { %2430 = vmatpush.bf16.msra.mxu1 %v4021_v53  ;;  %v4042_v53 = vld [vmem:[%s5078_s1 + $0x508] sm:$0xff] }
  0x90   :  { %2443 = vmatpush.bf16.msra.mxu2 %v4029_v54  ;;  %v4050_v54 = vld [vmem:[%s5078_s1 + $0x548] sm:$0xff] }
  0x91   :  { %2456 = vmatpush.bf16.msra.mxu3 %v4037_v55  ;;  %v4058_v55 = vld [vmem:[%s5078_s1 + $0x588] sm:$0xff] }
  0x92   :  { %2418 = vmatpush.bf16.msra.mxu0 %v4012_v56  ;;  %v4066_v56 = vld [vmem:[%s5078_s1 + $0x5c8] sm:$0xff] }
  0x93   :  { %2431 = vmatpush.bf16.msra.mxu1 %v4020_v57  ;;  %v36_v57 = vld [vmem:[%s5079_s0 + $0x50] sm:$0xff] }
  0x94   :  { %2444 = vmatpush.bf16.msra.mxu2 %v4028_v58  ;;  %v37_v58 = vld [vmem:[%s5079_s0 + $0x58] sm:$0xff] }
  0x95   :  { %2457 = vmatpush.bf16.msra.mxu3 %v4036_v59  ;;  %v597_v4 = vunpack.c.h.b16 %v37_v58 }
  0x96   :  { %2419 = vmatpush.bf16.msra.mxu0 %v4011_v60 }
  0x97   :  { %2432 = vmatpush.bf16.msra.mxu1 %v4019_v61  ;;  %v4041_v61 = vld [vmem:[%s5078_s1 + $0x500] sm:$0xff]  ;;  %v629_v12 = vpack.c.b16 %v597_v4, %v597_v4  ;;  %v4119_v4 = vld [vmem:[%s5078_s1 + $0x770] sm:$0xff] }
  0x98   :  { %2445 = vmatpush.bf16.msra.mxu2 %v4027_v62  ;;  %v4049_v62 = vld [vmem:[%s5078_s1 + $0x540] sm:$0xff] }
  0x99   :  { %2458 = vmatpush.bf16.msra.mxu3 %v4035_v63  ;;  %v594_v63 = vunpack.c.l.b16 %v36_v57 }
  0x9a   :  { %2420 = vmatpush.bf16.msra.mxu0 %v4010_v0  ;;  %v596_v0 = vunpack.c.l.b16 %v37_v58 }
  0x9b   :  { %2433 = vmatpush.bf16.msra.mxu1 %v4018_v1  ;;  %v4057_v1 = vld [vmem:[%s5078_s1 + $0x580] sm:$0xff]  ;;  %v626_v9 = vpack.c.b16 %v594_v63, %v594_v63 }
  0x9c   :  { %2446 = vmatpush.bf16.msra.mxu2 %v4026_v2  ;;  %v4065_v2 = vld [vmem:[%s5078_s1 + $0x5c0] sm:$0xff] }
  0x9d   :  { %2459 = vmatpush.bf16.msra.mxu3 %v4034_v3  ;;  %v595_v3 = vunpack.c.h.b16 %v36_v57 }
  0x9e   :  { %2421 = vmatpush.bf16.msra.mxu0 %v4009_v6  ;;  %v2215_v31 = vpop.f32.mrf.mxu0  ;;  %v4088_v6 = vld [vmem:[%s5078_s1 + $0x678] sm:$0xff] }
  0x9f   :  { %2434 = vmatpush.bf16.msra.mxu1 %v4017_v7  ;;  %v2216_v34 = vadd.f32 %v4153_v28, %v2215_v31  ;;  %v2228_v35 = vpop.f32.mrf.mxu1  ;;  %v4096_v7 = vld [vmem:[%s5078_s1 + $0x6b8] sm:$0xff] }
  0xa0   :  { %2447 = vmatpush.bf16.msra.mxu2 %v4025_v10  ;;  %v628_v10 = vpack.c.b16 %v596_v0, %v596_v0  ;;  %v4092_v31 = vld [vmem:[%s5078_s1 + $0x698] sm:$0xff] }
  0xa1   :  { %2460 = vmatpush.bf16.msra.mxu3 %v4033_v11  ;;  %2422 = vmatmul.bf16.vlgmr.msra.gmra.mxu0 %v622_v18  ;;  %v2229_v38 = vadd.f32 %v2228_v35, %v2216_v34  ;;  %v627_v11 = vpack.c.b16 %v595_v3, %v595_v3  ;;  %v4086_v18 = vld [vmem:[%s5078_s1 + $0x668] sm:$0xff]  ;;  %v4111_v3 = vld [vmem:[%s5078_s1 + $0x730] sm:$0xff] }
  0xa2   :  { %2466 = vmatpush.bf16.msrb.mxu0 %v4048_v14  ;;  %2435 = vmatmul.bf16.vlgmr.msra.gmra.mxu1 %v623_v20  ;;  %v4087_v14 = vld [vmem:[%s5078_s1 + $0x670] sm:$0xff]  ;;  %v4102_v20 = vld [vmem:[%s5078_s1 + $0x6e8] sm:$0xff] }
  0xa3   :  { %2479 = vmatpush.bf16.msrb.mxu1 %v4056_v15  ;;  %2448 = vmatmul.bf16.vlgmr.msra.gmra.mxu2 %v624_v19  ;;  %v4095_v15 = vld [vmem:[%s5078_s1 + $0x6b0] sm:$0xff]  ;;  %v4094_v19 = vld [vmem:[%s5078_s1 + $0x6a8] sm:$0xff] }
  0xa4   :  { %2492 = vmatpush.bf16.msrb.mxu2 %v4064_v16  ;;  %2461 = vmatmul.bf16.vlgmr.msra.gmra.mxu3 %v625_v21  ;;  %v4103_v16 = vld [vmem:[%s5078_s1 + $0x6f0] sm:$0xff] }
  0xa5   :  { %2505 = vmatpush.bf16.msrb.mxu3 %v4072_v17  ;;  %v4078_v17 = vld [vmem:[%s5078_s1 + $0x628] sm:$0xff] }
  0xa6   :  { %2467 = vmatpush.bf16.msrb.mxu0 %v4047_v22  ;;  %v2241_v43 = vpop.f32.mrf.mxu2  ;;  %v2217_v46 = vpop.f32.mrf.mxu0  ;;  %v4077_v22 = vld [vmem:[%s5078_s1 + $0x620] sm:$0xff] }
  0xa7   :  { %2480 = vmatpush.bf16.msrb.mxu1 %v4055_v23  ;;  %v2242_v44 = vadd.f32 %v2241_v43, %v2229_v38  ;;  %v2254_v45 = vpop.f32.mrf.mxu3  ;;  %v2230_v50 = vpop.f32.mrf.mxu1  ;;  %v4085_v23 = vld [vmem:[%s5078_s1 + $0x660] sm:$0xff]  ;;  %v4083_v38 = vld [vmem:[%s5078_s1 + $0x650] sm:$0xff]  ;;  %v4074_v43 = vld [vmem:[%s5078_s1 + $0x608] sm:$0xff] }
  0xa8   :  { %2493 = vmatpush.bf16.msrb.mxu2 %v4063_v24  ;;  %v4098_v46 = vld [vmem:[%s5078_s1 + $0x6c8] sm:$0xff] }
  0xa9   :  { %2506 = vmatpush.bf16.msrb.mxu3 %v4071_v25  ;;  %v4775_v49 = vadd.f32 %v2254_v45, %v2242_v44  ;;  %v4082_v44 = vld [vmem:[%s5078_s1 + $0x648] sm:$0xff] }
  0xaa   :  { %2468 = vmatpush.bf16.msrb.mxu0 %v4046_v26  ;;  %v4093_v26 = vld [vmem:[%s5078_s1 + $0x6a0] sm:$0xff]  ;;  %v4090_v45 = vld [vmem:[%s5078_s1 + $0x688] sm:$0xff] }
  0xab   :  { %2481 = vmatpush.bf16.msrb.mxu1 %v4054_v27  ;;  %v4101_v27 = vld [vmem:[%s5078_s1 + $0x6e0] sm:$0xff] }
  0xac   :  { %2494 = vmatpush.bf16.msrb.mxu2 %v4062_v29  ;;  %v4076_v29 = vld [vmem:[%s5078_s1 + $0x618] sm:$0xff] }
  0xad   :  { %2507 = vmatpush.bf16.msrb.mxu3 %v4070_v30  ;;  %v4084_v30 = vld [vmem:[%s5078_s1 + $0x658] sm:$0xff] }
  0xae   :  { %2469 = vmatpush.bf16.msrb.mxu0 %v4045_v32  ;;  %v2243_v59 = vpop.f32.mrf.mxu2  ;;  %v4100_v32 = vld [vmem:[%s5078_s1 + $0x6d8] sm:$0xff] }
  0xaf   :  { %2482 = vmatpush.bf16.msrb.mxu1 %v4053_v33  ;;  %v2256_v60 = vpop.f32.mrf.mxu3  ;;  %v4112_v59 = vld [vmem:[%s5078_s1 + $0x738] sm:$0xff] }
  0xb0   :  { %2495 = vmatpush.bf16.msrb.mxu2 %v4061_v36  ;;  %v4120_v60 = vld [vmem:[%s5078_s1 + $0x778] sm:$0xff] }
  0xb1   :  { %2508 = vmatpush.bf16.msrb.mxu3 %v4069_v37  ;;  %v4075_v37 = vld [vmem:[%s5078_s1 + $0x610] sm:$0xff] }
  0xb2   :  { %2470 = vmatpush.bf16.msrb.mxu0 %v4044_v39 }
  0xb3   :  { %2483 = vmatpush.bf16.msrb.mxu1 %v4052_v40 }
  0xb4   :  { %2496 = vmatpush.bf16.msrb.mxu2 %v4060_v41  ;;  %v4091_v41 = vld [vmem:[%s5078_s1 + $0x690] sm:$0xff] }
  0xb5   :  { %2509 = vmatpush.bf16.msrb.mxu3 %v4068_v42  ;;  %v4099_v42 = vld [vmem:[%s5078_s1 + $0x6d0] sm:$0xff] }
  0xb6   :  { %2471 = vmatpush.bf16.msrb.mxu0 %v4043_v47  ;;  %v38_v47 = vld [vmem:[%s5079_s0 + $0x60] sm:$0xff] }
  0xb7   :  { %2484 = vmatpush.bf16.msrb.mxu1 %v4051_v48  ;;  %v39_v48 = vld [vmem:[%s5079_s0 + $0x68] sm:$0xff]  ;;  %v599_v57 = vunpack.c.h.b16 %v38_v47 }
  0xb8   :  { %2497 = vmatpush.bf16.msrb.mxu2 %v4059_v51  ;;  %v4073_v51 = vld [vmem:[%s5078_s1 + $0x600] sm:$0xff]  ;;  %v601_v58 = vunpack.c.h.b16 %v39_v48 }
  0xb9   :  { %2510 = vmatpush.bf16.msrb.mxu3 %v4067_v52  ;;  %v4081_v52 = vld [vmem:[%s5078_s1 + $0x640] sm:$0xff] }
  0xba   :  { %2472 = vmatpush.bf16.msrb.mxu0 %v4042_v53  ;;  %v598_v53 = vunpack.c.l.b16 %v38_v47  ;;  %v4121_v47 = vld [vmem:[%s5078_s1 + $0x780] sm:$0xff] }
  0xbb   :  { %2485 = vmatpush.bf16.msrb.mxu1 %v4050_v54  ;;  %v600_v54 = vunpack.c.l.b16 %v39_v48  ;;  %v4129_v48 = vld [vmem:[%s5078_s1 + $0x7c0] sm:$0xff] }
  0xbc   :  { %2498 = vmatpush.bf16.msrb.mxu2 %v4058_v55  ;;  %v4089_v55 = vld [vmem:[%s5078_s1 + $0x680] sm:$0xff]  ;;  %v630_v63 = vpack.c.b16 %v598_v53, %v598_v53 }
  0xbd   :  { %2511 = vmatpush.bf16.msrb.mxu3 %v4066_v56  ;;  %v4097_v56 = vld [vmem:[%s5078_s1 + $0x6c0] sm:$0xff]  ;;  %v632_v0 = vpack.c.b16 %v600_v54, %v600_v54 }
  0xbe   :  { %2473 = vmatpush.bf16.msrb.mxu0 %v4041_v61  ;;  %v2267_v21 = vpop.f32.mrf.mxu0  ;;  %v4128_v61 = vld [vmem:[%s5078_s1 + $0x7b8] sm:$0xff] }
  0xbf   :  { %2486 = vmatpush.bf16.msrb.mxu1 %v4049_v62  ;;  %v2268_v24 = vadd.f32 %v2267_v21, %v4775_v49  ;;  %v2280_v25 = vpop.f32.mrf.mxu1  ;;  %v4136_v62 = vld [vmem:[%s5078_s1 + $0x7f8] sm:$0xff] }
  0xc0   :  { %2499 = vmatpush.bf16.msrb.mxu2 %v4057_v1  ;;  %v631_v1 = vpack.c.b16 %v599_v57, %v599_v57  ;;  %v4124_v21 = vld [vmem:[%s5078_s1 + $0x798] sm:$0xff] }
  0xc1   :  { %2512 = vmatpush.bf16.msrb.mxu3 %v4065_v2  ;;  %2474 = vmatmul.bf16.vlgmr.msrb.gmra.mxu0 %v626_v9  ;;  %v2281_v28 = vadd.f32 %v2280_v25, %v2268_v24  ;;  %v633_v2 = vpack.c.b16 %v601_v58, %v601_v58  ;;  %v4126_v9 = vld [vmem:[%s5078_s1 + $0x7a8] sm:$0xff] }
  0xc2   :  { %2518 = vmatpush.bf16.msra.mxu0 %v4080_v5  ;;  %2487 = vmatmul.bf16.vlgmr.msrb.gmra.mxu1 %v627_v11  ;;  %v4127_v5 = vld [vmem:[%s5078_s1 + $0x7b0] sm:$0xff] }
  0xc3   :  { %2531 = vmatpush.bf16.msra.mxu1 %v4088_v6  ;;  %2500 = vmatmul.bf16.vlgmr.msrb.gmra.mxu2 %v628_v10  ;;  %v4135_v6 = vld [vmem:[%s5078_s1 + $0x7f0] sm:$0xff]  ;;  %v4134_v10 = vld [vmem:[%s5078_s1 + $0x7e8] sm:$0xff] }
  0xc4   :  { %2544 = vmatpush.bf16.msra.mxu2 %v4096_v7  ;;  %2513 = vmatmul.bf16.vlgmr.msrb.gmra.mxu3 %v629_v12  ;;  %v4110_v7 = vld [vmem:[%s5078_s1 + $0x728] sm:$0xff] }
  0xc5   :  { %2557 = vmatpush.bf16.msra.mxu3 %v4104_v8  ;;  %v4118_v8 = vld [vmem:[%s5078_s1 + $0x768] sm:$0xff] }
  0xc6   :  { %2519 = vmatpush.bf16.msra.mxu0 %v4079_v13  ;;  %v2293_v33 = vpop.f32.mrf.mxu2  ;;  %v2269_v36 = vpop.f32.mrf.mxu0  ;;  %v4109_v13 = vld [vmem:[%s5078_s1 + $0x720] sm:$0xff] }
  0xc7   :  { %2532 = vmatpush.bf16.msra.mxu1 %v4087_v14  ;;  %v2294_v34 = vadd.f32 %v2293_v33, %v2281_v28  ;;  %v2306_v35 = vpop.f32.mrf.mxu3  ;;  %v2282_v40 = vpop.f32.mrf.mxu1  ;;  %v4117_v14 = vld [vmem:[%s5078_s1 + $0x760] sm:$0xff]  ;;  %v4107_v28 = vld [vmem:[%s5078_s1 + $0x710] sm:$0xff]  ;;  %v4106_v33 = vld [vmem:[%s5078_s1 + $0x708] sm:$0xff] }
  0xc8   :  { %2545 = vmatpush.bf16.msra.mxu2 %v4095_v15  ;;  %v4122_v36 = vld [vmem:[%s5078_s1 + $0x788] sm:$0xff] }
  0xc9   :  { %2558 = vmatpush.bf16.msra.mxu3 %v4103_v16  ;;  %v4880_v39 = vadd.f32 %v2306_v35, %v2294_v34  ;;  %v4125_v16 = vld [vmem:[%s5078_s1 + $0x7a0] sm:$0xff]  ;;  %v4114_v34 = vld [vmem:[%s5078_s1 + $0x748] sm:$0xff]  ;;  %v40_v35 = vld [vmem:[%s5079_s0 + $0x70] sm:$0xff] }
  0xca   :  { %2520 = vmatpush.bf16.msra.mxu0 %v4078_v17  ;;  %v4133_v17 = vld [vmem:[%s5078_s1 + $0x7e0] sm:$0xff] }
  0xcb   :  { %2533 = vmatpush.bf16.msra.mxu1 %v4086_v18 }
  0xcc   :  { %2546 = vmatpush.bf16.msra.mxu2 %v4094_v19  ;;  %v4108_v19 = vld [vmem:[%s5078_s1 + $0x718] sm:$0xff] }
  0xcd   :  { %2559 = vmatpush.bf16.msra.mxu3 %v4102_v20  ;;  %v4116_v20 = vld [vmem:[%s5078_s1 + $0x758] sm:$0xff] }
  0xce   :  { %2521 = vmatpush.bf16.msra.mxu0 %v4077_v22  ;;  %v2295_v49 = vpop.f32.mrf.mxu2  ;;  %v4132_v22 = vld [vmem:[%s5078_s1 + $0x7d8] sm:$0xff] }
  0xcf   :  { %2534 = vmatpush.bf16.msra.mxu1 %v4085_v23  ;;  %v2308_v50 = vpop.f32.mrf.mxu3 }
  0xd0   :  { %2547 = vmatpush.bf16.msra.mxu2 %v4093_v26 }
  0xd1   :  { %2560 = vmatpush.bf16.msra.mxu3 %v4101_v27 }
  0xd2   :  { %2522 = vmatpush.bf16.msra.mxu0 %v4076_v29  ;;  %v4115_v29 = vld [vmem:[%s5078_s1 + $0x750] sm:$0xff] }
  0xd3   :  { %2535 = vmatpush.bf16.msra.mxu1 %v4084_v30 }
  0xd4   :  { %2548 = vmatpush.bf16.msra.mxu2 %v4092_v31  ;;  %v4123_v31 = vld [vmem:[%s5078_s1 + $0x790] sm:$0xff] }
  0xd5   :  { %2561 = vmatpush.bf16.msra.mxu3 %v4100_v32  ;;  %v4131_v32 = vld [vmem:[%s5078_s1 + $0x7d0] sm:$0xff] }
  0xd6   :  { %2523 = vmatpush.bf16.msra.mxu0 %v4075_v37  ;;  %v4130_v37 = vld [vmem:[%s5078_s1 + $0x7c8] sm:$0xff] }
  0xd7   :  { %2536 = vmatpush.bf16.msra.mxu1 %v4083_v38  ;;  %v41_v38 = vld [vmem:[%s5079_s0 + $0x78] sm:$0xff] }
  0xd8   :  { %2549 = vmatpush.bf16.msra.mxu2 %v4091_v41  ;;  %v602_v41 = vunpack.c.l.b16 %v40_v35 }
  0xd9   :  { %2562 = vmatpush.bf16.msra.mxu3 %v4099_v42  ;;  %v603_v42 = vunpack.c.h.b16 %v40_v35 }
  0xda   :  { %2524 = vmatpush.bf16.msra.mxu0 %v4074_v43  ;;  %v4105_v43 = vld [vmem:[%s5078_s1 + $0x700] sm:$0xff]  ;;  %v634_v49 = vpack.c.b16 %v602_v41, %v602_v41  ;;  %v4151_v41 = vld [vmem:[%s5083_s5 + $0x30] sm:$0xff] }
  0xdb   :  { %2537 = vmatpush.bf16.msra.mxu1 %v4082_v44  ;;  %v4113_v44 = vld [vmem:[%s5078_s1 + $0x740] sm:$0xff]  ;;  %v635_v50 = vpack.c.b16 %v603_v42, %v603_v42 }
  0xdc   :  { %2550 = vmatpush.bf16.msra.mxu2 %v4090_v45  ;;  %v604_v45 = vunpack.c.l.b16 %v41_v38 }
  0xdd   :  { %2563 = vmatpush.bf16.msra.mxu3 %v4098_v46  ;;  %v605_v46 = vunpack.c.h.b16 %v41_v38  ;;  %v4152_v38 = vld [vmem:[%s5083_s5 + $0x38] sm:$0xff] }
  0xde   :  { %2525 = vmatpush.bf16.msra.mxu0 %v4073_v51  ;;  %v2319_v11 = vpop.f32.mrf.mxu0  ;;  %v636_v51 = vpack.c.b16 %v604_v45, %v604_v45 }
  0xdf   :  { %2538 = vmatpush.bf16.msra.mxu1 %v4081_v52  ;;  %v2320_v12 = vadd.f32 %v2319_v11, %v4880_v39  ;;  %v2332_v15 = vpop.f32.mrf.mxu1  ;;  %v637_v52 = vpack.c.b16 %v605_v46, %v605_v46  ;;  %v4149_v46 = vld [vmem:[%s5083_s5 + $0x20] sm:$0xff] }
  0xe0   :  { %2551 = vmatpush.bf16.msra.mxu2 %v4089_v55 }
  0xe1   :  { %2564 = vmatpush.bf16.msra.mxu3 %v4097_v56  ;;  %2526 = vmatmul.bf16.vlgmr.msra.gmra.mxu0 %v630_v63  ;;  %v2333_v18 = vadd.f32 %v2332_v15, %v2320_v12 }
  0xe2   :  { %2570 = vmatpush.bf16.msrb.mxu0 %v4112_v59  ;;  %2539 = vmatmul.bf16.vlgmr.msra.gmra.mxu1 %v631_v1 }
  0xe3   :  { %2583 = vmatpush.bf16.msrb.mxu1 %v4120_v60  ;;  %2552 = vmatmul.bf16.vlgmr.msra.gmra.mxu2 %v632_v0 }
  0xe4   :  { %2596 = vmatpush.bf16.msrb.mxu2 %v4128_v61  ;;  %2565 = vmatmul.bf16.vlgmr.msra.gmra.mxu3 %v633_v2 }
  0xe5   :  { %2609 = vmatpush.bf16.msrb.mxu3 %v4136_v62 }
  0xe6   :  { %2571 = vmatpush.bf16.msrb.mxu0 %v4111_v3  ;;  %v2345_v23 = vpop.f32.mrf.mxu2  ;;  %v2321_v26 = vpop.f32.mrf.mxu0 }
  0xe7   :  { %2584 = vmatpush.bf16.msrb.mxu1 %v4119_v4  ;;  %v2346_v24 = vadd.f32 %v2345_v23, %v2333_v18  ;;  %v2358_v25 = vpop.f32.mrf.mxu3  ;;  %v2334_v30 = vpop.f32.mrf.mxu1 }
  0xe8   :  { %2597 = vmatpush.bf16.msrb.mxu2 %v4127_v5 }
  0xe9   :  { %2610 = vmatpush.bf16.msrb.mxu3 %v4135_v6  ;;  %v2359_v27 = vadd.f32 %v2358_v25, %v2346_v24  ;;  %v4141_v24 = vld [vmem:[%s5082_s3 + $0x20] sm:$0xff]  ;;  %v4140_v25 = vld [vmem:[%s5082_s3 + $0x18] sm:$0xff] }
  0xea   :  { %2572 = vmatpush.bf16.msrb.mxu0 %v4110_v7 }
  0xeb   :  { %2585 = vmatpush.bf16.msrb.mxu1 %v4118_v8 }
  0xec   :  { %2598 = vmatpush.bf16.msrb.mxu2 %v4126_v9 }
  0xed   :  { %2611 = vmatpush.bf16.msrb.mxu3 %v4134_v10 }
  0xee   :  { %2573 = vmatpush.bf16.msrb.mxu0 %v4109_v13  ;;  %v2347_v39 = vpop.f32.mrf.mxu2 }
  0xef   :  { %2586 = vmatpush.bf16.msrb.mxu1 %v4117_v14  ;;  %v2360_v40 = vpop.f32.mrf.mxu3 }
  0xf0   :  { %2599 = vmatpush.bf16.msrb.mxu2 %v4125_v16 }
  0xf1   :  { %2612 = vmatpush.bf16.msrb.mxu3 %v4133_v17  ;;  %v4144_v17 = vld [vmem:[%s5082_s3 + $0x38] sm:$0xff] }
  0xf2   :  { %2574 = vmatpush.bf16.msrb.mxu0 %v4108_v19 }
  0xf3   :  { %2587 = vmatpush.bf16.msrb.mxu1 %v4116_v20  ;;  %v4143_v20 = vld [vmem:[%s5082_s3 + $0x30] sm:$0xff] }
  0xf4   :  { %2600 = vmatpush.bf16.msrb.mxu2 %v4124_v21  ;;  %v4142_v21 = vld [vmem:[%s5082_s3 + $0x28] sm:$0xff] }
  0xf5   :  { %2613 = vmatpush.bf16.msrb.mxu3 %v4132_v22 }
  0xf6   :  { %2575 = vmatpush.bf16.msrb.mxu0 %v4107_v28 }
  0xf7   :  { %2588 = vmatpush.bf16.msrb.mxu1 %v4115_v29  ;;  %v4138_v29 = vld [vmem:[%s5082_s3 + $0x8] sm:$0xff] }
  0xf8   :  { %2601 = vmatpush.bf16.msrb.mxu2 %v4123_v31 }
  0xf9   :  { %2614 = vmatpush.bf16.msrb.mxu3 %v4131_v32 }
  0xfa   :  { %2576 = vmatpush.bf16.msrb.mxu0 %v4106_v33 }
  0xfb   :  { %2589 = vmatpush.bf16.msrb.mxu1 %v4114_v34  ;;  %v4137_v34 = vld [vmem:[%s5082_s3] sm:$0xff] }
  0xfc   :  { %2602 = vmatpush.bf16.msrb.mxu2 %v4122_v36 }
  0xfd   :  { %2615 = vmatpush.bf16.msrb.mxu3 %v4130_v37 }
  0xfe   :  { %2577 = vmatpush.bf16.msrb.mxu0 %v4105_v43  ;;  %v2371_v53 = vpop.f32.mrf.mxu0 }
  0xff   :  { %2590 = vmatpush.bf16.msrb.mxu1 %v4113_v44  ;;  %v2372_v54 = vadd.f32 %v2371_v53, %v2359_v27  ;;  %v2384_v55 = vpop.f32.mrf.mxu1  ;;  %v4139_v27 = vld [vmem:[%s5082_s3 + $0x10] sm:$0xff]  ;;  %v4150_v44 = vld [vmem:[%s5083_s5 + $0x28] sm:$0xff] }
 0x100   :  { %2603 = vmatpush.bf16.msrb.mxu2 %v4121_v47  ;;  %v4147_v53 = vld [vmem:[%s5083_s5 + $0x10] sm:$0xff] }
 0x101   :  { %2616 = vmatpush.bf16.msrb.mxu3 %v4129_v48  ;;  %2578 = vmatmul.bf16.vlgmr.msrb.gmra.mxu0 %v634_v49  ;;  %v2385_v56 = vadd.f32 %v2384_v55, %v2372_v54  ;;  %v4148_v48 = vld [vmem:[%s5083_s5 + $0x18] sm:$0xff] }
 0x102   :  { %2591 = vmatmul.bf16.vlgmr.msrb.gmra.mxu1 %v635_v50  ;;  %2692 = vmatpush.bf16.msra.mxu0 %v4144_v17 }
 0x103   :  { %2604 = vmatmul.bf16.vlgmr.msrb.gmra.mxu2 %v636_v51  ;;  %2775 = vmatpush.bf16.msra.mxu1 %v4152_v38 }
 0x104   :  { %2617 = vmatmul.bf16.vlgmr.msrb.gmra.mxu3 %v637_v52 }
 0x106   :  { %v2397_v57 = vpop.f32.mrf.mxu2  ;;  %v2373_v60 = vpop.f32.mrf.mxu0  ;;  %2693 = vmatpush.bf16.msra.mxu0 %v4143_v20 }
 0x107   :  { %v2398_v58 = vadd.f32 %v2397_v57, %v2385_v56  ;;  %v2410_v59 = vpop.f32.mrf.mxu3  ;;  %v2386_v62 = vpop.f32.mrf.mxu1  ;;  %2776 = vmatpush.bf16.msra.mxu1 %v4151_v41 }
 0x109   :  { %v2411_v61 = vadd.f32 %v2410_v59, %v2398_v58 }
 0x10a   :  { %2694 = vmatpush.bf16.msra.mxu0 %v4142_v21 }
 0x10b   :  { %2777 = vmatpush.bf16.msra.mxu1 %v4150_v44 }
 0x10e   :  { %v2399_v63 = vpop.f32.mrf.mxu2  ;;  %2695 = vmatpush.bf16.msra.mxu0 %v4141_v24 }
 0x10f   :  { %v2412_v0 = vpop.f32.mrf.mxu3  ;;  %2778 = vmatpush.bf16.msra.mxu1 %v4149_v46 }
 0x112   :  { %2696 = vmatpush.bf16.msra.mxu0 %v4140_v25 }
 0x113   :  { %2779 = vmatpush.bf16.msra.mxu1 %v4148_v48 }
 0x116   :  { %2697 = vmatpush.bf16.msra.mxu0 %v4139_v27 }
 0x117   :  { %2780 = vmatpush.bf16.msra.mxu1 %v4147_v53 }
 0x11a   :  { %2698 = vmatpush.bf16.msra.mxu0 %v4138_v29 }
 0x11e   :  { %v2423_v1 = vpop.f32.mrf.mxu0  ;;  %2699 = vmatpush.bf16.msra.mxu0 %v4137_v34 }
 0x11f   :  { %v2424_v2 = vadd.f32 %v2423_v1, %v2411_v61  ;;  %v2436_v3 = vpop.f32.mrf.mxu1  ;;  %v4146_v1 = vld [vmem:[%s5083_s5 + $0x8] sm:$0xff] }
 0x120   :  { %2781 = vmatpush.bf16.msra.mxu1 %v4146_v1 }
 0x121   :  { %v2437_v4 = vadd.f32 %v2436_v3, %v2424_v2  ;;  %v4145_v2 = vld [vmem:[%s5083_s5] sm:$0xff] }
 0x122   :  { %v4154_v3 = vld [vmem:[%s5081_s4] ss:$0 sm:$0xff] }
 0x124   :  { %2782 = vmatpush.bf16.msra.mxu1 %v4145_v2 }
 0x126   :  { %v2449_v5 = vpop.f32.mrf.mxu2  ;;  %v2425_v8 = vpop.f32.mrf.mxu0 }
 0x127   :  { %v2450_v6 = vadd.f32 %v2449_v5, %v2437_v4  ;;  %v2462_v7 = vpop.f32.mrf.mxu3  ;;  %v2438_v10 = vpop.f32.mrf.mxu1 }
 0x129   :  { %v2463_v9 = vadd.f32 %v2462_v7, %v2450_v6 }
 0x12e   :  { %v2451_v11 = vpop.f32.mrf.mxu2 }
 0x12f   :  { %v2464_v12 = vpop.f32.mrf.mxu3 }
 0x13e   :  { %v2475_v13 = vpop.f32.mrf.mxu0 }
 0x13f   :  { %v2488_v14 = vpop.f32.mrf.mxu1  ;;  %v2476_v31 = vadd.f32 %v2475_v13, %v2463_v9  ;;  %v4155_v9 = vld [vmem:[%s5084_s6] ss:$0 sm:$0xff] }
 0x141   :  { %v2489_v36 = vadd.f32 %v2488_v14, %v2476_v31 }
 0x146   :  { %v2501_v15 = vpop.f32.mrf.mxu2  ;;  %v2477_v18 = vpop.f32.mrf.mxu0 }
 0x147   :  { %v2514_v16 = vpop.f32.mrf.mxu3  ;;  %v2490_v19 = vpop.f32.mrf.mxu1  ;;  %v2502_v37 = vadd.f32 %v2501_v15, %v2489_v36 }
 0x149   :  { %v2515_v42 = vadd.f32 %v2514_v16, %v2502_v37 }
 0x14e   :  { %v2503_v22 = vpop.f32.mrf.mxu2 }
 0x14f   :  { %v2516_v23 = vpop.f32.mrf.mxu3 }
 0x15e   :  { %v2527_v26 = vpop.f32.mrf.mxu0 }
 0x15f   :  { %v2540_v28 = vpop.f32.mrf.mxu1  ;;  %v2528_v43 = vadd.f32 %v2527_v26, %v2515_v42 }
 0x161   :  { %v2541_v45 = vadd.f32 %v2540_v28, %v2528_v43 }
 0x166   :  { %v2553_v30 = vpop.f32.mrf.mxu2  ;;  %v2529_v33 = vpop.f32.mrf.mxu0 }
 0x167   :  { %v2566_v32 = vpop.f32.mrf.mxu3  ;;  %v2542_v35 = vpop.f32.mrf.mxu1  ;;  %v2554_v47 = vadd.f32 %v2553_v30, %v2541_v45 }
 0x169   :  { %v2567_v49 = vadd.f32 %v2566_v32, %v2554_v47 }
 0x16e   :  { %v2555_v39 = vpop.f32.mrf.mxu2 }
 0x16f   :  { %v2568_v40 = vpop.f32.mrf.mxu3 }
 0x17e   :  { %v2579_v50 = vpop.f32.mrf.mxu0 }
 0x17f   :  { %v2592_v51 = vpop.f32.mrf.mxu1  ;;  %v2580_v52 = vadd.f32 %v2579_v50, %v2567_v49 }
 0x181   :  { %v2593_v54 = vadd.f32 %v2592_v51, %v2580_v52 }
 0x186   :  { %v2605_v55 = vpop.f32.mrf.mxu2  ;;  %v2581_v58 = vpop.f32.mrf.mxu0 }
 0x187   :  { %v2618_v56 = vpop.f32.mrf.mxu3  ;;  %v2606_v57 = vadd.f32 %v2605_v55, %v2593_v54  ;;  %v2594_v59 = vpop.f32.mrf.mxu1 }
 0x189   :  { %v2619_v60 = vadd.f32 %v2618_v56, %v2606_v57 }
 0x18b   :  { %v2622_v61 = vmax.f32 %v2619_v60, 0.0 }
 0x18d   :  { %v2623_v62 = vpack.c.bf16 %v2622_v61, %v2622_v61 }
 0x18e   :  { %v2607_v63 = vpop.f32.mrf.mxu2 }
 0x18f   :  { %v2620_v0 = vpop.f32.mrf.mxu3  ;;  %2700 = vmatmul.bf16.vlgmr.msra.gmra.mxu0 %v2623_v62 }
 0x20c   :  { %v2701_v4 = vpop.f32.mrf.mxu0 }
 0x20d   :  { %v2702_v5 = vadd.f32 %v4154_v3, %v2701_v4 }
 0x20f   :  { %v2705_v6 = vmax.f32 %v2702_v5, 0.0 }
 0x211   :  { %v2706_v7 = vpack.c.bf16 %v2705_v6, %v2705_v6 }
 0x213   :  { %2783 = vmatmul.bf16.vlgmr.msra.gmra.mxu1 %v2706_v7 }
 0x214   :  { %v2703_v8 = vpop.f32.mrf.mxu0 }
 0x290   :  { %v2784_v10 = vpop.f32.mrf.mxu1 }
 0x291   :  { %v2785_v11 = vadd.f32 %v4155_v9, %v2784_v10 }
 0x293   :  { %2788 = vst [vmem:[%s5085_s7] sm:$0xff] %v2785_v11 }
 0x298   :  { %v2786_v12 = vpop.f32.mrf.mxu1 }

</bundles_post_ra>
